<compile_context>
chip_gen: v6e
topology: v6e:2x2x1
jax: 0.10.0
libtpu: 0.0.40
codegen_flags: <defaults>
</compile_context>

<pallas_src>
import functools

import jax
import jax.numpy as jnp
from jax.experimental import pallas as pl
from jax.experimental.pallas import tpu as pltpu

NUM_JOINTS = 24
SOFTMAX_TEMP = 1.0


def _round_up(x, m):
    return (x + m - 1) // m * m


# ----------------------------- Pallas kernels ------------------------------

def _mm_bias_kernel(a_ref, b_ref, bias_ref, o_ref, acc_ref, *, relu):
    """Tiled matmul with fp32 accumulation; bias (+ optional relu) fused at the end."""
    @pl.when(pl.program_id(2) == 0)
    def _init():
        acc_ref[...] = jnp.zeros_like(acc_ref)

    acc_ref[...] += jnp.dot(a_ref[...], b_ref[...],
                            preferred_element_type=jnp.float32)

    @pl.when(pl.program_id(2) == pl.num_programs(2) - 1)
    def _finalize():
        out = acc_ref[...] + bias_ref[...]
        if relu:
            out = jnp.maximum(out, 0.0)
        o_ref[...] = out.astype(o_ref.dtype)


def pallas_linear(a, w, b, *, relu=False, out_dtype=jnp.float32,
                  tm=512, tn=256, tk=512):
    """(M, K) @ (K, N) + b[N] as a tiled, pipelined bf16 MXU matmul.

    Inputs are cast to bf16 (fp32 accumulate), padded to tile multiples (lane-dense
    N >= 128), and the result is sliced back to (M, N).
    """
    M, K = a.shape
    K2, N = w.shape
    assert K == K2 and b.shape == (N,)

    tm = min(tm, _round_up(M, 8))
    tn = min(tn, _round_up(N, 128))
    tk = min(tk, _round_up(K, 128))
    Mp, Np, Kp = _round_up(M, tm), _round_up(N, tn), _round_up(K, tk)

    a_p = jnp.pad(a.astype(jnp.bfloat16), ((0, Mp - M), (0, Kp - K)))
    w_p = jnp.pad(w.astype(jnp.bfloat16), ((0, Kp - K), (0, Np - N)))
    b_p = jnp.pad(b.astype(jnp.float32), (0, Np - N)).reshape(1, Np)

    grid = (Mp // tm, Np // tn, Kp // tk)

    out = pl.pallas_call(
        functools.partial(_mm_bias_kernel, relu=relu),
        out_shape=jax.ShapeDtypeStruct((Mp, Np), out_dtype),
        grid=grid,
        in_specs=[
            pl.BlockSpec((tm, tk), lambda i, j, k: (i, k)),
            pl.BlockSpec((tk, tn), lambda i, j, k: (k, j)),
            pl.BlockSpec((1, tn), lambda i, j, k: (0, j)),
        ],
        out_specs=pl.BlockSpec((tm, tn), lambda i, j, k: (i, j)),
        scratch_shapes=[pltpu.VMEM((tm, tn), jnp.float32)],
        compiler_params=pltpu.CompilerParams(
            dimension_semantics=("parallel", "parallel", "arbitrary")),
    )(a_p, w_p, b_p)

    if (Mp, Np) != (M, N):
        out = out[:M, :N]
    return out


def _attn_pool_kernel(hm_ref, feat_ref, o_ref, *, temp):
    """Spatial softmax over HW per heatmap channel, then pooled features p^T @ feat.

    hm_ref:   (1, HW, Kp)  fp32 heatmap slab (Kp lane-padded to 128)
    feat_ref: (1, HW, C)   bf16 features (smpl_feats | cam_shape_feats concatenated)
    o_ref:    (1, Kp, C)   fp32 pooled output
    """
    hm = hm_ref[0].T.astype(jnp.float32)                 # (Kp, HW), in-VMEM transpose
    if temp != 1.0:                                       # drop dead vmul when temp==1
        hm = hm * temp
    hm = hm - jnp.max(hm, axis=-1, keepdims=True)
    p = jnp.exp(hm)
    p = p * pl.reciprocal(jnp.sum(p, axis=-1, keepdims=True), approx=True)
    o_ref[0] = jnp.dot(p.astype(feat_ref.dtype), feat_ref[0],
                       preferred_element_type=jnp.float32)


def keypoint_attention_pool(heatmaps, feats, temp=1.0):
    """heatmaps: (B, HW, Kp), feats: (B, HW, C) -> pooled (B, Kp, C).

    One softmax per heatmap channel (over HW), one shared kernel for both feature
    streams (they are concatenated along C). Rows >= num_joints of the output are
    junk from the lane padding and are sliced off by the caller.
    """
    B, HW, Kp = heatmaps.shape
    B2, HW2, C = feats.shape
    assert B == B2 and HW == HW2
    return pl.pallas_call(
        functools.partial(_attn_pool_kernel, temp=temp),
        out_shape=jax.ShapeDtypeStruct((B, Kp, C), jnp.float32),
        grid=(B,),
        in_specs=[pl.BlockSpec((1, HW, Kp), lambda b: (b, 0, 0)),
                  pl.BlockSpec((1, HW, C), lambda b: (b, 0, 0))],
        out_specs=pl.BlockSpec((1, Kp, C), lambda b: (b, 0, 0)),
        compiler_params=pltpu.CompilerParams(dimension_semantics=("parallel",)),
    )(heatmaps.astype(jnp.float32), feats.astype(jnp.bfloat16))


# ------------------------------- JAX glue ----------------------------------

def rot6d_to_rotmat(x):
    """PARE's rot6d_to_rotmat: (..., 6) -> (N, 3, 3) via Gram-Schmidt."""
    x = x.reshape(-1, 3, 2)
    a1 = x[:, :, 0]
    a2 = x[:, :, 1]
    b1 = a1 / jnp.clip(jnp.linalg.norm(a1, axis=-1, keepdims=True), 1e-8)
    dot = jnp.sum(b1 * a2, axis=-1, keepdims=True)
    b2u = a2 - dot * b1
    b2 = b2u / jnp.clip(jnp.linalg.norm(b2u, axis=-1, keepdims=True), 1e-8)
    b3 = jnp.cross(b1, b2)
    return jnp.stack([b1, b2, b3], axis=-1)


def rotmat_to_axis_angle(R):
    """rotation_matrix_to_axis_angle: (N, 3, 3) -> (N, 3)."""
    trace = R[..., 0, 0] + R[..., 1, 1] + R[..., 2, 2]
    cos = jnp.clip((trace - 1.0) * 0.5, -1.0, 1.0)
    angle = jnp.arccos(cos)
    rx = R[..., 2, 1] - R[..., 1, 2]
    ry = R[..., 0, 2] - R[..., 2, 0]
    rz = R[..., 1, 0] - R[..., 0, 1]
    axis = jnp.stack([rx, ry, rz], axis=-1)
    sin = jnp.sin(angle)
    # small-angle limit: angle / (2 sin) -> 0.5
    scale = jnp.where(sin > 1e-6, angle / (2.0 * jnp.maximum(sin, 1e-12)), 0.5)
    # TODO(synk): angle ~ pi branch of the exact kornia conversion is not handled.
    return axis * scale[..., None]


# ------------------------------ parameters ---------------------------------

def init_params(key, c_back=64, c_kp=32, c_smpl=32, f_smpl=8, num_joints=NUM_JOINTS):
    keys = jax.random.split(key, 8)

    def w(k, shape, scale=0.05):
        return scale * jax.random.normal(k, shape, jnp.float32)

    return {
        'bb_w': w(keys[0], (3, 3, 3, c_back)),
        'bb_b': jnp.zeros((c_back,), jnp.float32),
        'kp_deconv_w': w(keys[1], (c_back, c_kp)),
        'kp_deconv_b': jnp.zeros((c_kp,), jnp.float32),
        'kp_final_w': w(keys[2], (c_kp, num_joints)),
        'kp_final_b': jnp.zeros((num_joints,), jnp.float32),
        'smpl_deconv_w': w(keys[3], (c_back, c_smpl)),
        'smpl_deconv_b': jnp.zeros((c_smpl,), jnp.float32),
        'smpl_final_w': w(keys[4], (c_smpl, f_smpl)),
        'smpl_final_b': jnp.zeros((f_smpl,), jnp.float32),
        'pose_w': w(keys[5], (c_smpl, 6)),
        'pose_b': jnp.zeros((6,), jnp.float32),
        'shape_w': w(keys[6], (num_joints * f_smpl, 10)),
        'shape_b': jnp.zeros((10,), jnp.float32),
        'cam_w': w(keys[7], (num_joints * f_smpl, 3)),
        'cam_b': jnp.zeros((3,), jnp.float32),
    }


# ------------------------------- forward -----------------------------------

def pare_forward(params, images):
    """images: (B, 3, H, W) NCHW like the PyTorch module."""
    x = jnp.transpose(images, (0, 2, 3, 1)).astype(jnp.float32)          # -> NHWC

    # --- backbone stem (compact stand-in for ResNet50 + deconv stacks) ---
    # TODO(synk): full ResNet50 is replaced by one 3x3/stride-2 conv; lax.conv avoids
    #             materializing a 9x im2col patch tensor in HBM (per perf review).
    feats = jax.lax.conv_general_dilated(
        x, params['bb_w'], window_strides=(2, 2), padding=((1, 1), (1, 1)),
        dimension_numbers=('NHWC', 'HWIO', 'NHWC'))
    feats = jax.nn.relu(feats + params['bb_b'])
    B, H, W, Cb = feats.shape
    HW = H * W
    fflat = feats.reshape(B * HW, Cb)

    c_kp = params['kp_deconv_w'].shape[1]
    c_smpl = params['smpl_deconv_w'].shape[1]
    K = params['kp_final_w'].shape[1]           # num joints
    F = params['smpl_final_w'].shape[1]         # smpl cam/shape feature width

    # --- fused branch projections: [kp_deconv | smpl_deconv], relu fused in kernel ---
    w_deconv = jnp.concatenate([params['kp_deconv_w'], params['smpl_deconv_w']], axis=1)
    b_deconv = jnp.concatenate([params['kp_deconv_b'], params['smpl_deconv_b']], axis=0)
    proj = pallas_linear(fflat, w_deconv, b_deconv, relu=True)   # (B*HW, c_kp+c_smpl)

    # --- fused final 1x1 convs: block-diagonal weight, lane-dense 128-wide output ---
    slab_n = max(128, _round_up(K + F, 128))
    w_final = jnp.zeros((c_kp + c_smpl, slab_n), jnp.float32)
    w_final = w_final.at[:c_kp, :K].set(params['kp_final_w'])
    w_final = w_final.at[c_kp:, K:K + F].set(params['smpl_final_w'])
    b_final = jnp.zeros((slab_n,), jnp.float32)
    b_final = b_final.at[:K].set(params['kp_final_b'])
    b_final = b_final.at[K:K + F].set(params['smpl_final_b'])
    slab = pallas_linear(proj, w_final, b_final)                 # (B*HW, slab_n)
    # slab columns [:K] = part heatmaps, [K:K+F] = cam/shape features, rest zero.

    hm_slab = slab.reshape(B, HW, slab_n)                        # no HBM transpose
    smpl_feats = proj[:, c_kp:].reshape(B, HW, c_smpl)
    cam_shape_feats = slab[:, K:K + F].reshape(B, HW, F)
    feats_cat = jnp.concatenate([smpl_feats, cam_shape_feats], axis=-1)  # (B,HW,c_smpl+F)

    # --- keypoint attention pooling: one softmax, both feature maps pooled ---
    pooled = keypoint_attention_pool(hm_slab, feats_cat, temp=SOFTMAX_TEMP)  # (B,slab_n,C)
    point_local_feat = pooled[:, :K, :c_smpl]                    # (B, K, c_smpl)
    cam_shape_pool = pooled[:, :K, c_smpl:]                      # (B, K, F)

    # --- tiny regression heads in plain JAX (Pallas launch overhead would dominate) ---
    pose6d = point_local_feat.reshape(B * K, c_smpl) @ params['pose_w'] + params['pose_b']
    xc = cam_shape_pool.reshape(B, K * F)
    w_sc = jnp.concatenate([params['shape_w'], params['cam_w']], axis=1)   # (K*F, 13)
    b_sc = jnp.concatenate([params['shape_b'], params['cam_b']], axis=0)
    shape_cam = xc @ w_sc + b_sc
    pred_shape = shape_cam[:, :10]
    # pred_cam = shape_cam[:, 10:]   # computed by PareHead but unused by PARE.forward

    # --- rot6d -> rotmat -> axis-angle (as in PARE.forward) ---
    rotmat = rot6d_to_rotmat(pose6d).reshape(B, K, 3, 3)
    rvec = rotmat_to_axis_angle(rotmat.reshape(-1, 3, 3)).reshape(B, K * 3)

    return {
        'Rh': rvec[..., :3],
        'Th': jnp.zeros_like(rvec[..., :3]),
        'poses': rvec[..., 3:],
        'shapes': pred_shape,
    }


if __name__ == "__main__":
    key = jax.random.PRNGKey(0)
    k_img, k_par = jax.random.split(key)

    B, H, W = 2, 32, 32
    images = jax.random.normal(k_img, (B, 3, H, W), jnp.float32)
    params = init_params(k_par)

    out = jax.jit(pare_forward)(params, images)
    out = jax.block_until_ready(out)

    assert out['Rh'].shape == (B, 3)
    assert out['Th'].shape == (B, 3)
    assert out['poses'].shape == (B, NUM_JOINTS * 3 - 3)
    assert out['shapes'].shape == (B, 10)
    assert all(bool(jnp.all(jnp.isfinite(v))) for v in out.values())

    print("KERNEL_OK")
</pallas_src>

<mosaic_0001>
module attributes {stable_mosaic.version = 11 : i64} {
  func.func @_mm_bias_kernel(%arg0: i32, %arg1: i32, %arg2: i32, %arg3: memref<512x128xbf16, #tpu.memory_space<vmem>>, %arg4: memref<128x128xbf16, #tpu.memory_space<vmem>>, %arg5: memref<1x128xf32, #tpu.memory_space<vmem>>, %arg6: memref<512x128xf32, #tpu.memory_space<vmem>>, %arg7: memref<512x128xf32, #tpu.memory_space<vmem>>) attributes {dimension_semantics = [#tpu.dimension_semantics<parallel>, #tpu.dimension_semantics<parallel>, #tpu.dimension_semantics<arbitrary>], iteration_bounds = array<i64: 1, 1, 1>, scalar_prefetch = 0 : i64, scratch_operands = 1 : i64, tpu.core_type = #tpu.core_type<tc>, window_params = [{transform_indices = @transform_0, window_bounds = array<i64: 512, 128>}, {transform_indices = @transform_1, window_bounds = array<i64: 128, 128>}, {transform_indices = @transform_2, window_bounds = array<i64: 1, 128>}, {transform_indices = @transform_3, window_bounds = array<i64: 512, 128>}]} {
    %c0_i32 = arith.constant 0 : i32
    %0 = arith.cmpi eq, %arg2, %c0_i32 : i32
    %1 = arith.extui %0 : i1 to i32
    %c0_i32_0 = arith.constant 0 : i32
    %2 = arith.cmpi ne, %1, %c0_i32_0 : i32
    scf.if %2 {
      %cst_10 = arith.constant 0.000000e+00 : f32
      %12 = vector.broadcast %cst_10 : f32 to vector<512x128xf32>
      %c0_11 = arith.constant 0 : index
      %c0_12 = arith.constant 0 : index
      %13 = vector.load %arg7[%c0_11, %c0_12] : memref<512x128xf32, #tpu.memory_space<vmem>>, vector<512x128xf32>
      tpu.vector_store %arg7[%c0_11, %c0_12], %12 {strides = array<i32>} : memref<512x128xf32, #tpu.memory_space<vmem>>, vector<512x128xf32>,
    } else {
    }
    %c0 = arith.constant 0 : index
    %c0_1 = arith.constant 0 : index
    %3 = vector.load %arg7[%c0, %c0_1] : memref<512x128xf32, #tpu.memory_space<vmem>>, vector<512x128xf32>
    %c0_2 = arith.constant 0 : index
    %c0_3 = arith.constant 0 : index
    %4 = vector.load %arg3[%c0_2, %c0_3] : memref<512x128xbf16, #tpu.memory_space<vmem>>, vector<512x128xbf16>
    %c0_4 = arith.constant 0 : index
    %c0_5 = arith.constant 0 : index
    %5 = vector.load %arg4[%c0_4, %c0_5] : memref<128x128xbf16, #tpu.memory_space<vmem>>, vector<128x128xbf16>
    %cst = arith.constant dense<0.000000e+00> : vector<512x128xf32>
    %6 = tpu.matmul %4, %5, %cst {dimension_numbers = #tpu.dot_dimension_numbers<[1], [0], [0], [1], [0, 0, 1, 1], [], []>} : vector<512x128xbf16>, vector<128x128xbf16>, vector<512x128xf32> -> vector<512x128xf32>
    %7 = arith.addf %3, %6 : vector<512x128xf32>
    %c0_6 = arith.constant 0 : index
    %c0_7 = arith.constant 0 : index
    %8 = vector.load %arg7[%c0_6, %c0_7] : memref<512x128xf32, #tpu.memory_space<vmem>>, vector<512x128xf32>
    tpu.vector_store %arg7[%c0_6, %c0_7], %7 {strides = array<i32>} : memref<512x128xf32, #tpu.memory_space<vmem>>, vector<512x128xf32>,
    %c0_i32_8 = arith.constant 0 : i32
    %9 = arith.cmpi eq, %arg2, %c0_i32_8 : i32
    %10 = arith.extui %9 : i1 to i32
    %c0_i32_9 = arith.constant 0 : i32
    %11 = arith.cmpi ne, %10, %c0_i32_9 : i32
    scf.if %11 {
      %c0_10 = arith.constant 0 : index
      %c0_11 = arith.constant 0 : index
      %12 = vector.load %arg7[%c0_10, %c0_11] : memref<512x128xf32, #tpu.memory_space<vmem>>, vector<512x128xf32>
      %c0_12 = arith.constant 0 : index
      %c0_13 = arith.constant 0 : index
      %13 = vector.load %arg5[%c0_12, %c0_13] : memref<1x128xf32, #tpu.memory_space<vmem>>, vector<1x128xf32>
      %14 = vector.broadcast %13 : vector<1x128xf32> to vector<512x128xf32>
      %15 = arith.addf %12, %14 : vector<512x128xf32>
      %cst_14 = arith.constant 0.000000e+00 : f32
      %16 = vector.broadcast %cst_14 : f32 to vector<512x128xf32>
      %17 = arith.maximumf %15, %16 : vector<512x128xf32>
      %c0_15 = arith.constant 0 : index
      %c0_16 = arith.constant 0 : index
      %18 = vector.load %arg6[%c0_15, %c0_16] : memref<512x128xf32, #tpu.memory_space<vmem>>, vector<512x128xf32>
      tpu.vector_store %arg6[%c0_15, %c0_16], %17 {strides = array<i32>} : memref<512x128xf32, #tpu.memory_space<vmem>>, vector<512x128xf32>,
    } else {
    }
    return
  }
  func.func @transform_0(%arg0: i32, %arg1: i32, %arg2: i32) -> (i32, i32) {
    %c0_i32 = arith.constant 0 : i32
    return %arg0, %arg2 : i32, i32
  }
  func.func @transform_1(%arg0: i32, %arg1: i32, %arg2: i32) -> (i32, i32) {
    %c0_i32 = arith.constant 0 : i32
    return %arg2, %arg1 : i32, i32
  }
  func.func @transform_2(%arg0: i32, %arg1: i32, %arg2: i32) -> (i32, i32) {
    %c0_i32 = arith.constant 0 : i32
    %c0_i32_0 = arith.constant 0 : i32
    return %c0_i32, %arg1 : i32, i32
  }
  func.func @transform_3(%arg0: i32, %arg1: i32, %arg2: i32) -> (i32, i32) {
    %c0_i32 = arith.constant 0 : i32
    return %arg0, %arg1 : i32, i32
  }
}

module attributes {stable_mosaic.version = 11 : i64} {
  func.func @_mm_bias_kernel(%arg0: i32, %arg1: i32, %arg2: i32, %arg3: memref<512x128xbf16, #tpu.memory_space<vmem>>, %arg4: memref<128x128xbf16, #tpu.memory_space<vmem>>, %arg5: memref<1x128xf32, #tpu.memory_space<vmem>>, %arg6: memref<512x128xf32, #tpu.memory_space<vmem>>, %arg7: memref<512x128xf32, #tpu.memory_space<vmem>>) attributes {dimension_semantics = [#tpu.dimension_semantics<parallel>, #tpu.dimension_semantics<parallel>, #tpu.dimension_semantics<arbitrary>], iteration_bounds = array<i64: 1, 1, 1>, scalar_prefetch = 0 : i64, scratch_operands = 1 : i64, tpu.core_type = #tpu.core_type<tc>, window_params = [{transform_indices = @transform_0, window_bounds = array<i64: 512, 128>}, {transform_indices = @transform_1, window_bounds = array<i64: 128, 128>}, {transform_indices = @transform_2, window_bounds = array<i64: 1, 128>}, {transform_indices = @transform_3, window_bounds = array<i64: 512, 128>}]} {
    %c0_i32 = arith.constant 0 : i32
    %0 = arith.cmpi eq, %arg2, %c0_i32 : i32
    %1 = arith.extui %0 : i1 to i32
    %c0_i32_0 = arith.constant 0 : i32
    %2 = arith.cmpi ne, %1, %c0_i32_0 : i32
    scf.if %2 {
      %cst_10 = arith.constant 0.000000e+00 : f32
      %12 = vector.broadcast %cst_10 : f32 to vector<512x128xf32>
      %c0_11 = arith.constant 0 : index
      %c0_12 = arith.constant 0 : index
      %13 = vector.load %arg7[%c0_11, %c0_12] : memref<512x128xf32, #tpu.memory_space<vmem>>, vector<512x128xf32>
      tpu.vector_store %arg7[%c0_11, %c0_12], %12 {strides = array<i32>} : memref<512x128xf32, #tpu.memory_space<vmem>>, vector<512x128xf32>,
    } else {
    }
    %c0 = arith.constant 0 : index
    %c0_1 = arith.constant 0 : index
    %3 = vector.load %arg7[%c0, %c0_1] : memref<512x128xf32, #tpu.memory_space<vmem>>, vector<512x128xf32>
    %c0_2 = arith.constant 0 : index
    %c0_3 = arith.constant 0 : index
    %4 = vector.load %arg3[%c0_2, %c0_3] : memref<512x128xbf16, #tpu.memory_space<vmem>>, vector<512x128xbf16>
    %c0_4 = arith.constant 0 : index
    %c0_5 = arith.constant 0 : index
    %5 = vector.load %arg4[%c0_4, %c0_5] : memref<128x128xbf16, #tpu.memory_space<vmem>>, vector<128x128xbf16>
    %cst = arith.constant dense<0.000000e+00> : vector<512x128xf32>
    %6 = tpu.matmul %4, %5, %cst {dimension_numbers = #tpu.dot_dimension_numbers<[1], [0], [0], [1], [0, 0, 1, 1], [], []>} : vector<512x128xbf16>, vector<128x128xbf16>, vector<512x128xf32> -> vector<512x128xf32>
    %7 = arith.addf %3, %6 : vector<512x128xf32>
    %c0_6 = arith.constant 0 : index
    %c0_7 = arith.constant 0 : index
    %8 = vector.load %arg7[%c0_6, %c0_7] : memref<512x128xf32, #tpu.memory_space<vmem>>, vector<512x128xf32>
    tpu.vector_store %arg7[%c0_6, %c0_7], %7 {strides = array<i32>} : memref<512x128xf32, #tpu.memory_space<vmem>>, vector<512x128xf32>,
    %c0_i32_8 = arith.constant 0 : i32
    %9 = arith.cmpi eq, %arg2, %c0_i32_8 : i32
    %10 = arith.extui %9 : i1 to i32
    %c0_i32_9 = arith.constant 0 : i32
    %11 = arith.cmpi ne, %10, %c0_i32_9 : i32
    scf.if %11 {
      %c0_10 = arith.constant 0 : index
      %c0_11 = arith.constant 0 : index
      %12 = vector.load %arg7[%c0_10, %c0_11] : memref<512x128xf32, #tpu.memory_space<vmem>>, vector<512x128xf32>
      %c0_12 = arith.constant 0 : index
      %c0_13 = arith.constant 0 : index
      %13 = vector.load %arg5[%c0_12, %c0_13] : memref<1x128xf32, #tpu.memory_space<vmem>>, vector<1x128xf32>
      %14 = vector.broadcast %13 : vector<1x128xf32> to vector<512x128xf32>
      %15 = arith.addf %12, %14 : vector<512x128xf32>
      %c0_14 = arith.constant 0 : index
      %c0_15 = arith.constant 0 : index
      %16 = vector.load %arg6[%c0_14, %c0_15] : memref<512x128xf32, #tpu.memory_space<vmem>>, vector<512x128xf32>
      tpu.vector_store %arg6[%c0_14, %c0_15], %15 {strides = array<i32>} : memref<512x128xf32, #tpu.memory_space<vmem>>, vector<512x128xf32>,
    } else {
    }
    return
  }
  func.func @transform_0(%arg0: i32, %arg1: i32, %arg2: i32) -> (i32, i32) {
    %c0_i32 = arith.constant 0 : i32
    return %arg0, %arg2 : i32, i32
  }
  func.func @transform_1(%arg0: i32, %arg1: i32, %arg2: i32) -> (i32, i32) {
    %c0_i32 = arith.constant 0 : i32
    return %arg2, %arg1 : i32, i32
  }
  func.func @transform_2(%arg0: i32, %arg1: i32, %arg2: i32) -> (i32, i32) {
    %c0_i32 = arith.constant 0 : i32
    %c0_i32_0 = arith.constant 0 : i32
    return %c0_i32, %arg1 : i32, i32
  }
  func.func @transform_3(%arg0: i32, %arg1: i32, %arg2: i32) -> (i32, i32) {
    %c0_i32 = arith.constant 0 : i32
    return %arg0, %arg1 : i32, i32
  }
}

module attributes {stable_mosaic.version = 11 : i64} {
  func.func @_attn_pool_kernel(%arg0: i32, %arg1: memref<1x256x128xf32, #tpu.memory_space<vmem>>, %arg2: memref<1x256x40xbf16, #tpu.memory_space<vmem>>, %arg3: memref<1x128x40xf32, #tpu.memory_space<vmem>>) attributes {dimension_semantics = [#tpu.dimension_semantics<parallel>], iteration_bounds = array<i64: 2>, scalar_prefetch = 0 : i64, scratch_operands = 0 : i64, tpu.core_type = #tpu.core_type<tc>, window_params = [{transform_indices = @transform_0, window_bounds = array<i64: 1, 256, 128>}, {transform_indices = @transform_1, window_bounds = array<i64: 1, 256, 40>}, {transform_indices = @transform_2, window_bounds = array<i64: 1, 128, 40>}]} {
    %c0 = arith.constant 0 : index
    %c0_0 = arith.constant 0 : index
    %c0_1 = arith.constant 0 : index
    %0 = vector.load %arg1[%c0, %c0_0, %c0_1] : memref<1x256x128xf32, #tpu.memory_space<vmem>>, vector<1x256x128xf32>
    %1 = vector.shape_cast %0 : vector<1x256x128xf32> to vector<256x128xf32>
    %2 = tpu.transpose %1, [1, 0] : vector<256x128xf32> -> vector<128x256xf32>
    %cst = arith.constant dense<0xFF800000> : vector<128xf32>
    %3 = vector.multi_reduction <maximumf>, %2, %cst [1] : vector<128x256xf32> to vector<128xf32>
    %4 = vector.shape_cast %3 : vector<128xf32> to vector<128x1xf32>
    %5 = vector.broadcast %4 : vector<128x1xf32> to vector<128x256xf32>
    %6 = arith.subf %2, %5 : vector<128x256xf32>
    %7 = math.exp %6 : vector<128x256xf32>
    %cst_2 = arith.constant dense<0.000000e+00> : vector<128xf32>
    %8 = vector.multi_reduction <add>, %7, %cst_2 [1] : vector<128x256xf32> to vector<128xf32>
    %9 = vector.shape_cast %8 : vector<128xf32> to vector<128x1xf32>
    %10 = tpu.reciprocal %9 {approx = true} : vector<128x1xf32> -> vector<128x1xf32>
    %11 = vector.broadcast %10 : vector<128x1xf32> to vector<128x256xf32>
    %12 = arith.mulf %7, %11 : vector<128x256xf32>
    %13 = arith.truncf %12 : vector<128x256xf32> to vector<128x256xbf16>
    %c0_3 = arith.constant 0 : index
    %c0_4 = arith.constant 0 : index
    %c0_5 = arith.constant 0 : index
    %14 = vector.load %arg2[%c0_3, %c0_4, %c0_5] : memref<1x256x40xbf16, #tpu.memory_space<vmem>>, vector<1x256x40xbf16>
    %15 = vector.shape_cast %14 : vector<1x256x40xbf16> to vector<256x40xbf16>
    %cst_6 = arith.constant dense<0.000000e+00> : vector<128x40xf32>
    %16 = tpu.matmul %13, %15, %cst_6 {dimension_numbers = #tpu.dot_dimension_numbers<[1], [0], [0], [1], [0, 0, 1, 1], [], []>} : vector<128x256xbf16>, vector<256x40xbf16>, vector<128x40xf32> -> vector<128x40xf32>
    %c0_7 = arith.constant 0 : index
    %c0_8 = arith.constant 0 : index
    %c0_9 = arith.constant 0 : index
    %17 = vector.load %arg3[%c0_7, %c0_8, %c0_9] : memref<1x128x40xf32, #tpu.memory_space<vmem>>, vector<1x128x40xf32>
    %18 = vector.shape_cast %17 : vector<1x128x40xf32> to vector<128x40xf32>
    %19 = vector.shape_cast %16 : vector<128x40xf32> to vector<1x128x40xf32>
    tpu.vector_store %arg3[%c0_7, %c0_8, %c0_9], %19 {strides = array<i32>} : memref<1x128x40xf32, #tpu.memory_space<vmem>>, vector<1x128x40xf32>,
    return
  }
  func.func @transform_0(%arg0: i32) -> (i32, i32, i32) {
    %c0_i32 = arith.constant 0 : i32
    %c0_i32_0 = arith.constant 0 : i32
    %c0_i32_1 = arith.constant 0 : i32
    return %arg0, %c0_i32, %c0_i32_0 : i32, i32, i32
  }
  func.func @transform_1(%arg0: i32) -> (i32, i32, i32) {
    %c0_i32 = arith.constant 0 : i32
    %c0_i32_0 = arith.constant 0 : i32
    %c0_i32_1 = arith.constant 0 : i32
    return %arg0, %c0_i32, %c0_i32_0 : i32, i32, i32
  }
  func.func @transform_2(%arg0: i32) -> (i32, i32, i32) {
    %c0_i32 = arith.constant 0 : i32
    %c0_i32_0 = arith.constant 0 : i32
    %c0_i32_1 = arith.constant 0 : i32
    return %arg0, %c0_i32, %c0_i32_0 : i32, i32, i32
  }
}

</mosaic_0001>

<bundles_post_ra>
// kernel: pare_forward.3
= control target key start
LH: loop header
LB: loop body
LE: loop exit
PB: predicated region body
PF: predicated region fallthrough
CT: control target
= control target key end

     0   :  { %s1772_s1 = inlined_call_operand.vmem [shape: bf16[128,128], index: 1, kind: input, shape index: {}]   ;;  %s1773_s0 = inlined_call_operand.vmem [shape: bf16[512,128], index: 0, kind: input, shape index: {}]   ;;  %s1774_s2 = inlined_call_operand.vmem [shape: f32[1,128], index: 2, kind: input, shape index: {}]   ;;  %s1775_s3 = inlined_call_operand.vmem [shape: f32[512,128], index: 3, kind: output, shape index: {}]  }
   0x1   :  { %v1331_v0 = vld [vmem:[%s1772_s1 + $0x38] sm:$0xff]   ;;  %v1332_v1 = vld [vmem:[%s1772_s1 + $0x30] sm:$0xff]   ;;  %v1333_v2 = vld [vmem:[%s1772_s1 + $0x28] sm:$0xff]  }
   0x2   :  { %1235 = vmatprep.subr.bf16.mxu0 %v1331_v0  ;;  %1315 = vmatprep.subr.bf16.mxu1 %v1331_v0  ;;  %v1334_v3 = vld [vmem:[%s1772_s1 + $0x20] sm:$0xff]   ;;  %v1335_v6 = vld [vmem:[%s1772_s1 + $0x18] sm:$0xff]   ;;  %v1336_v7 = vld [vmem:[%s1772_s1 + $0x10] sm:$0xff]  }
   0x3   :  { %1236 = vmatpush3.bf16.msra.mxu0 %v1331_v0  ;;  %1323 = vmatpush3.bf16.msra.mxu1 %v1331_v0  ;;  %v1339_v4 = vld [vmem:[%s1773_s0] sm:$0xff]   ;;  %v1337_v8 = vld [vmem:[%s1772_s1 + $0x8] sm:$0xff]   ;;  %v1343_v12 = vld [vmem:[%s1773_s0 + $0x10] sm:$0xff]  }
   0x4   :  { %1237 = vmatprep.subr.bf16.mxu0 %v1332_v1  ;;  %1316 = vmatprep.subr.bf16.mxu1 %v1332_v1  ;;  %v1340_v5 = vld [vmem:[%s1773_s0 + $0x80] sm:$0xff]   ;;  %v1341_v10 = vld [vmem:[%s1773_s0 + $0x8] sm:$0xff]   ;;  %v1344_v13 = vld [vmem:[%s1773_s0 + $0x90] sm:$0xff]  }
   0x5   :  { %1251 = vmatprep.mubr.bf16.mxu0 %v1339_v4  ;;  %1283 = vmatprep.mubr.bf16.mxu1 %v1340_v5  ;;  %v1338_v9 = vld [vmem:[%s1772_s1] sm:$0xff]   ;;  %v1342_v11 = vld [vmem:[%s1773_s0 + $0x88] sm:$0xff]   ;;  %v1345_v14 = vld [vmem:[%s1773_s0 + $0x18] sm:$0xff]  }
   0x6   :  { %v1346_v15 = vld [vmem:[%s1773_s0 + $0x98] sm:$0xff]   ;;  %v1347_v16 = vld [vmem:[%s1773_s0 + $0x20] sm:$0xff]   ;;  %v1349_v18 = vld [vmem:[%s1773_s0 + $0x28] sm:$0xff]  }
   0x7   :  { %1238 = vmatpush3.bf16.msra.mxu0 %v1332_v1  ;;  %1324 = vmatpush3.bf16.msra.mxu1 %v1332_v1  ;;  %v1348_v17 = vld [vmem:[%s1773_s0 + $0xa0] sm:$0xff]   ;;  %v1350_v19 = vld [vmem:[%s1773_s0 + $0xa8] sm:$0xff]   ;;  %v1351_v20 = vld [vmem:[%s1773_s0 + $0x30] sm:$0xff]  }
   0x8   :  { %1239 = vmatprep.subr.bf16.mxu0 %v1333_v2  ;;  %1317 = vmatprep.subr.bf16.mxu1 %v1333_v2  ;;  %v1352_v21 = vld [vmem:[%s1773_s0 + $0xb0] sm:$0xff]   ;;  %v1353_v22 = vld [vmem:[%s1773_s0 + $0x38] sm:$0xff]   ;;  %v1355_v24 = vld [vmem:[%s1773_s0 + $0x40] sm:$0xff]  }
   0x9   :  { %v1354_v23 = vld [vmem:[%s1773_s0 + $0xb8] sm:$0xff]   ;;  %v1356_v25 = vld [vmem:[%s1773_s0 + $0xc0] sm:$0xff]   ;;  %v1357_v26 = vld [vmem:[%s1773_s0 + $0x48] sm:$0xff]  }
   0xa   :  { %v1358_v27 = vld [vmem:[%s1773_s0 + $0xc8] sm:$0xff]   ;;  %v1359_v28 = vld [vmem:[%s1773_s0 + $0x50] sm:$0xff]   ;;  %v1361_v30 = vld [vmem:[%s1773_s0 + $0x58] sm:$0xff]  }
   0xb   :  { %1240 = vmatpush3.bf16.msra.mxu0 %v1333_v2  ;;  %1325 = vmatpush3.bf16.msra.mxu1 %v1333_v2  ;;  %v1360_v29 = vld [vmem:[%s1773_s0 + $0xd0] sm:$0xff]   ;;  %v1362_v31 = vld [vmem:[%s1773_s0 + $0xd8] sm:$0xff]   ;;  %v1363_v32 = vld [vmem:[%s1773_s0 + $0x60] sm:$0xff]  }
   0xc   :  { %1241 = vmatprep.subr.bf16.mxu0 %v1334_v3  ;;  %1318 = vmatprep.subr.bf16.mxu1 %v1334_v3  ;;  %v1364_v33 = vld [vmem:[%s1773_s0 + $0xe0] sm:$0xff]   ;;  %v1365_v34 = vld [vmem:[%s1773_s0 + $0x68] sm:$0xff]   ;;  %v1367_v36 = vld [vmem:[%s1773_s0 + $0x70] sm:$0xff]  }
   0xd   :  { %v1366_v35 = vld [vmem:[%s1773_s0 + $0xe8] sm:$0xff]   ;;  %v1368_v37 = vld [vmem:[%s1773_s0 + $0xf0] sm:$0xff]   ;;  %v1369_v38 = vld [vmem:[%s1773_s0 + $0x78] sm:$0xff]  }
   0xe   :  { %v1370_v39 = vld [vmem:[%s1773_s0 + $0xf8] sm:$0xff]   ;;  %v1514_v40 = vld [vmem:[%s1774_s2] ss:$0 sm:$0xff] }
   0xf   :  { %1242 = vmatpush3.bf16.msra.mxu0 %v1334_v3  ;;  %1326 = vmatpush3.bf16.msra.mxu1 %v1334_v3 }
  0x10   :  { %1243 = vmatprep.subr.bf16.mxu0 %v1335_v6  ;;  %1319 = vmatprep.subr.bf16.mxu1 %v1335_v6 }
  0x13   :  { %1244 = vmatpush3.bf16.msra.mxu0 %v1335_v6  ;;  %1327 = vmatpush3.bf16.msra.mxu1 %v1335_v6 }
  0x14   :  { %1245 = vmatprep.subr.bf16.mxu0 %v1336_v7  ;;  %1320 = vmatprep.subr.bf16.mxu1 %v1336_v7 }
  0x17   :  { %1246 = vmatpush3.bf16.msra.mxu0 %v1336_v7  ;;  %1328 = vmatpush3.bf16.msra.mxu1 %v1336_v7 }
  0x18   :  { %1247 = vmatprep.subr.bf16.mxu0 %v1337_v8  ;;  %1321 = vmatprep.subr.bf16.mxu1 %v1337_v8 }
  0x1b   :  { %1248 = vmatpush3.bf16.msra.mxu0 %v1337_v8  ;;  %1329 = vmatpush3.bf16.msra.mxu1 %v1337_v8 }
  0x1c   :  { %1249 = vmatprep.subr.bf16.mxu0 %v1338_v9  ;;  %1322 = vmatprep.subr.bf16.mxu1 %v1338_v9 }
  0x1f   :  { %1250 = vmatpush3.bf16.msra.mxu0 %v1338_v9  ;;  %1330 = vmatpush3.bf16.msra.mxu1 %v1338_v9 }
  0x22   :  { %1252 = vmatmul.mubr.bf16.vlgmr.msra.gmra.mxu0 %v1341_v10  ;;  %1284 = vmatmul.mubr.bf16.vlgmr.msra.gmra.mxu1 %v1342_v11 }
  0x23   :  { %1255 = vmatprep.mubr.bf16.mxu0 %v1343_v12  ;;  %1287 = vmatprep.mubr.bf16.mxu1 %v1344_v13 }
  0x2a   :  { %1256 = vmatmul.mubr.bf16.gmra.mxu0 %v1345_v14  ;;  %1288 = vmatmul.mubr.bf16.gmra.mxu1 %v1346_v15 }
  0x2b   :  { %1259 = vmatprep.mubr.bf16.mxu0 %v1347_v16  ;;  %1291 = vmatprep.mubr.bf16.mxu1 %v1348_v17 }
  0x32   :  { %1260 = vmatmul.mubr.bf16.gmra.mxu0 %v1349_v18  ;;  %1292 = vmatmul.mubr.bf16.gmra.mxu1 %v1350_v19 }
  0x33   :  { %1263 = vmatprep.mubr.bf16.mxu0 %v1351_v20  ;;  %1295 = vmatprep.mubr.bf16.mxu1 %v1352_v21 }
  0x3a   :  { %1264 = vmatmul.mubr.bf16.gmra.mxu0 %v1353_v22  ;;  %1296 = vmatmul.mubr.bf16.gmra.mxu1 %v1354_v23 }
  0x3b   :  { %1267 = vmatprep.mubr.bf16.mxu0 %v1355_v24  ;;  %1299 = vmatprep.mubr.bf16.mxu1 %v1356_v25 }
  0x42   :  { %1268 = vmatmul.mubr.bf16.gmra.mxu0 %v1357_v26  ;;  %1300 = vmatmul.mubr.bf16.gmra.mxu1 %v1358_v27 }
  0x43   :  { %1271 = vmatprep.mubr.bf16.mxu0 %v1359_v28  ;;  %1303 = vmatprep.mubr.bf16.mxu1 %v1360_v29 }
  0x4a   :  { %1272 = vmatmul.mubr.bf16.gmra.mxu0 %v1361_v30  ;;  %1304 = vmatmul.mubr.bf16.gmra.mxu1 %v1362_v31 }
  0x4b   :  { %1275 = vmatprep.mubr.bf16.mxu0 %v1363_v32  ;;  %1307 = vmatprep.mubr.bf16.mxu1 %v1364_v33 }
  0x52   :  { %1276 = vmatmul.mubr.bf16.gmra.mxu0 %v1365_v34  ;;  %1308 = vmatmul.mubr.bf16.gmra.mxu1 %v1366_v35 }
  0x53   :  { %1279 = vmatprep.mubr.bf16.mxu0 %v1367_v36  ;;  %1311 = vmatprep.mubr.bf16.mxu1 %v1368_v37 }
  0x5a   :  { %1280 = vmatmul.mubr.bf16.gmra.mxu0 %v1369_v38  ;;  %1312 = vmatmul.mubr.bf16.gmra.mxu1 %v1370_v39 }
  0xe2   :  { %v1253_v41 = vpop.f32.mrf.mxu0  ;;  %v1285_v42 = vpop.f32.mrf.mxu1 }
  0xe3   :  { %v960_v43 = vadd.f32 %v1253_v41, %v1514_v40  ;;  %v992_v44 = vadd.f32 %v1285_v42, %v1514_v40 }
  0xe4   :  { %v501_v45 = vpop.f32.mrf.mxu0  ;;  %v629_v46 = vpop.f32.mrf.mxu1 }
  0xe5   :  { %v1024_v47 = vmax.f32 %v960_v43, 0.0  ;;  %v1056_v48 = vmax.f32 %v992_v44, 0.0  ;;  %v958_v49 = vadd.f32 %v1514_v40, %v501_v45  ;;  %v990_v50 = vadd.f32 %v1514_v40, %v629_v46 }
  0xe6   :  { %v1254_v51 = vpop.f32.mrf.mxu0  ;;  %v1286_v52 = vpop.f32.mrf.mxu1 }
  0xe7   :  { %1088 = vst [vmem:[%s1775_s3 + $0x10] sm:$0xff] %v1024_v47  ;;  %1120 = vst [vmem:[%s1775_s3 + $0x110] sm:$0xff] %v1056_v48  ;;  %v1022_v53 = vmax.f32 %v958_v49, 0.0  ;;  %v1054_v54 = vmax.f32 %v990_v50, 0.0  ;;  %v961_v55 = vadd.f32 %v1254_v51, %v1514_v40  ;;  %v993_v56 = vadd.f32 %v1286_v52, %v1514_v40 }
  0xe8   :  { %v504_v57 = vpop.f32.mrf.mxu0  ;;  %v632_v58 = vpop.f32.mrf.mxu1 }
  0xe9   :  { %1086 = vst [vmem:[%s1775_s3] sm:$0xff] %v1022_v53  ;;  %1118 = vst [vmem:[%s1775_s3 + $0x100] sm:$0xff] %v1054_v54  ;;  %v1025_v59 = vmax.f32 %v961_v55, 0.0  ;;  %v1057_v60 = vmax.f32 %v993_v56, 0.0  ;;  %v959_v61 = vadd.f32 %v1514_v40, %v504_v57  ;;  %v991_v62 = vadd.f32 %v1514_v40, %v632_v58 }
  0xea   :  { %v1257_v63 = vpop.f32.mrf.mxu0  ;;  %v1289_v0 = vpop.f32.mrf.mxu1 }
  0xeb   :  { %1089 = vst [vmem:[%s1775_s3 + $0x18] sm:$0xff] %v1025_v59  ;;  %1121 = vst [vmem:[%s1775_s3 + $0x118] sm:$0xff] %v1057_v60  ;;  %v1023_v1 = vmax.f32 %v959_v61, 0.0  ;;  %v1055_v2 = vmax.f32 %v991_v62, 0.0  ;;  %v964_v3 = vadd.f32 %v1257_v63, %v1514_v40  ;;  %v996_v4 = vadd.f32 %v1289_v0, %v1514_v40 }
  0xec   :  { %v517_v5 = vpop.f32.mrf.mxu0  ;;  %v645_v6 = vpop.f32.mrf.mxu1 }
  0xed   :  { %1087 = vst [vmem:[%s1775_s3 + $0x8] sm:$0xff] %v1023_v1  ;;  %1119 = vst [vmem:[%s1775_s3 + $0x108] sm:$0xff] %v1055_v2  ;;  %v1028_v7 = vmax.f32 %v964_v3, 0.0  ;;  %v1060_v8 = vmax.f32 %v996_v4, 0.0  ;;  %v962_v9 = vadd.f32 %v1514_v40, %v517_v5  ;;  %v994_v10 = vadd.f32 %v1514_v40, %v645_v6 }
  0xee   :  { %v1258_v11 = vpop.f32.mrf.mxu0  ;;  %v1290_v12 = vpop.f32.mrf.mxu1 }
  0xef   :  { %1092 = vst [vmem:[%s1775_s3 + $0x30] sm:$0xff] %v1028_v7  ;;  %1124 = vst [vmem:[%s1775_s3 + $0x130] sm:$0xff] %v1060_v8  ;;  %v1026_v13 = vmax.f32 %v962_v9, 0.0  ;;  %v1058_v14 = vmax.f32 %v994_v10, 0.0  ;;  %v965_v15 = vadd.f32 %v1258_v11, %v1514_v40  ;;  %v997_v16 = vadd.f32 %v1290_v12, %v1514_v40 }
  0xf0   :  { %v520_v17 = vpop.f32.mrf.mxu0  ;;  %v648_v18 = vpop.f32.mrf.mxu1 }
  0xf1   :  { %1090 = vst [vmem:[%s1775_s3 + $0x20] sm:$0xff] %v1026_v13  ;;  %1122 = vst [vmem:[%s1775_s3 + $0x120] sm:$0xff] %v1058_v14  ;;  %v1029_v19 = vmax.f32 %v965_v15, 0.0  ;;  %v1061_v20 = vmax.f32 %v997_v16, 0.0  ;;  %v963_v21 = vadd.f32 %v1514_v40, %v520_v17  ;;  %v995_v22 = vadd.f32 %v1514_v40, %v648_v18 }
  0xf2   :  { %v1261_v23 = vpop.f32.mrf.mxu0  ;;  %v1293_v24 = vpop.f32.mrf.mxu1 }
  0xf3   :  { %1093 = vst [vmem:[%s1775_s3 + $0x38] sm:$0xff] %v1029_v19  ;;  %1125 = vst [vmem:[%s1775_s3 + $0x138] sm:$0xff] %v1061_v20  ;;  %v1027_v25 = vmax.f32 %v963_v21, 0.0  ;;  %v1059_v26 = vmax.f32 %v995_v22, 0.0  ;;  %v968_v27 = vadd.f32 %v1261_v23, %v1514_v40  ;;  %v1000_v28 = vadd.f32 %v1293_v24, %v1514_v40 }
  0xf4   :  { %v533_v29 = vpop.f32.mrf.mxu0  ;;  %v661_v30 = vpop.f32.mrf.mxu1 }
  0xf5   :  { %1091 = vst [vmem:[%s1775_s3 + $0x28] sm:$0xff] %v1027_v25  ;;  %1123 = vst [vmem:[%s1775_s3 + $0x128] sm:$0xff] %v1059_v26  ;;  %v1032_v31 = vmax.f32 %v968_v27, 0.0  ;;  %v1064_v32 = vmax.f32 %v1000_v28, 0.0  ;;  %v966_v33 = vadd.f32 %v1514_v40, %v533_v29  ;;  %v998_v34 = vadd.f32 %v1514_v40, %v661_v30 }
  0xf6   :  { %v1262_v35 = vpop.f32.mrf.mxu0  ;;  %v1294_v36 = vpop.f32.mrf.mxu1 }
  0xf7   :  { %1096 = vst [vmem:[%s1775_s3 + $0x50] sm:$0xff] %v1032_v31  ;;  %1128 = vst [vmem:[%s1775_s3 + $0x150] sm:$0xff] %v1064_v32  ;;  %v1030_v37 = vmax.f32 %v966_v33, 0.0  ;;  %v1062_v38 = vmax.f32 %v998_v34, 0.0  ;;  %v969_v39 = vadd.f32 %v1262_v35, %v1514_v40  ;;  %v1001_v41 = vadd.f32 %v1294_v36, %v1514_v40 }
  0xf8   :  { %v536_v42 = vpop.f32.mrf.mxu0  ;;  %v664_v43 = vpop.f32.mrf.mxu1 }
  0xf9   :  { %1094 = vst [vmem:[%s1775_s3 + $0x40] sm:$0xff] %v1030_v37  ;;  %1126 = vst [vmem:[%s1775_s3 + $0x140] sm:$0xff] %v1062_v38  ;;  %v1033_v44 = vmax.f32 %v969_v39, 0.0  ;;  %v1065_v45 = vmax.f32 %v1001_v41, 0.0  ;;  %v967_v46 = vadd.f32 %v1514_v40, %v536_v42  ;;  %v999_v47 = vadd.f32 %v1514_v40, %v664_v43 }
  0xfa   :  { %v1265_v48 = vpop.f32.mrf.mxu0  ;;  %v1297_v49 = vpop.f32.mrf.mxu1 }
  0xfb   :  { %1097 = vst [vmem:[%s1775_s3 + $0x58] sm:$0xff] %v1033_v44  ;;  %1129 = vst [vmem:[%s1775_s3 + $0x158] sm:$0xff] %v1065_v45  ;;  %v1031_v50 = vmax.f32 %v967_v46, 0.0  ;;  %v1063_v51 = vmax.f32 %v999_v47, 0.0  ;;  %v972_v52 = vadd.f32 %v1265_v48, %v1514_v40  ;;  %v1004_v53 = vadd.f32 %v1297_v49, %v1514_v40 }
  0xfc   :  { %v549_v54 = vpop.f32.mrf.mxu0  ;;  %v677_v55 = vpop.f32.mrf.mxu1 }
  0xfd   :  { %1095 = vst [vmem:[%s1775_s3 + $0x48] sm:$0xff] %v1031_v50  ;;  %1127 = vst [vmem:[%s1775_s3 + $0x148] sm:$0xff] %v1063_v51  ;;  %v1036_v56 = vmax.f32 %v972_v52, 0.0  ;;  %v1068_v57 = vmax.f32 %v1004_v53, 0.0  ;;  %v970_v58 = vadd.f32 %v1514_v40, %v549_v54  ;;  %v1002_v59 = vadd.f32 %v1514_v40, %v677_v55 }
  0xfe   :  { %v1266_v60 = vpop.f32.mrf.mxu0  ;;  %v1298_v61 = vpop.f32.mrf.mxu1 }
  0xff   :  { %1100 = vst [vmem:[%s1775_s3 + $0x70] sm:$0xff] %v1036_v56  ;;  %1132 = vst [vmem:[%s1775_s3 + $0x170] sm:$0xff] %v1068_v57  ;;  %v1034_v62 = vmax.f32 %v970_v58, 0.0  ;;  %v1066_v63 = vmax.f32 %v1002_v59, 0.0  ;;  %v973_v0 = vadd.f32 %v1266_v60, %v1514_v40  ;;  %v1005_v1 = vadd.f32 %v1298_v61, %v1514_v40 }
 0x100   :  { %v552_v2 = vpop.f32.mrf.mxu0  ;;  %v680_v3 = vpop.f32.mrf.mxu1 }
 0x101   :  { %1098 = vst [vmem:[%s1775_s3 + $0x60] sm:$0xff] %v1034_v62  ;;  %1130 = vst [vmem:[%s1775_s3 + $0x160] sm:$0xff] %v1066_v63  ;;  %v1037_v4 = vmax.f32 %v973_v0, 0.0  ;;  %v1069_v5 = vmax.f32 %v1005_v1, 0.0  ;;  %v971_v6 = vadd.f32 %v1514_v40, %v552_v2  ;;  %v1003_v7 = vadd.f32 %v1514_v40, %v680_v3 }
 0x102   :  { %v1269_v8 = vpop.f32.mrf.mxu0  ;;  %v1301_v9 = vpop.f32.mrf.mxu1 }
 0x103   :  { %1101 = vst [vmem:[%s1775_s3 + $0x78] sm:$0xff] %v1037_v4  ;;  %1133 = vst [vmem:[%s1775_s3 + $0x178] sm:$0xff] %v1069_v5  ;;  %v1035_v10 = vmax.f32 %v971_v6, 0.0  ;;  %v1067_v11 = vmax.f32 %v1003_v7, 0.0  ;;  %v976_v12 = vadd.f32 %v1269_v8, %v1514_v40  ;;  %v1008_v13 = vadd.f32 %v1301_v9, %v1514_v40 }
 0x104   :  { %v565_v14 = vpop.f32.mrf.mxu0  ;;  %v693_v15 = vpop.f32.mrf.mxu1 }
 0x105   :  { %1099 = vst [vmem:[%s1775_s3 + $0x68] sm:$0xff] %v1035_v10  ;;  %1131 = vst [vmem:[%s1775_s3 + $0x168] sm:$0xff] %v1067_v11  ;;  %v1040_v16 = vmax.f32 %v976_v12, 0.0  ;;  %v1072_v17 = vmax.f32 %v1008_v13, 0.0  ;;  %v974_v18 = vadd.f32 %v1514_v40, %v565_v14  ;;  %v1006_v19 = vadd.f32 %v1514_v40, %v693_v15 }
 0x106   :  { %v1270_v20 = vpop.f32.mrf.mxu0  ;;  %v1302_v21 = vpop.f32.mrf.mxu1 }
 0x107   :  { %1104 = vst [vmem:[%s1775_s3 + $0x90] sm:$0xff] %v1040_v16  ;;  %1136 = vst [vmem:[%s1775_s3 + $0x190] sm:$0xff] %v1072_v17  ;;  %v1038_v22 = vmax.f32 %v974_v18, 0.0  ;;  %v1070_v23 = vmax.f32 %v1006_v19, 0.0  ;;  %v977_v24 = vadd.f32 %v1270_v20, %v1514_v40  ;;  %v1009_v25 = vadd.f32 %v1302_v21, %v1514_v40 }
 0x108   :  { %v568_v26 = vpop.f32.mrf.mxu0  ;;  %v696_v27 = vpop.f32.mrf.mxu1 }
 0x109   :  { %1102 = vst [vmem:[%s1775_s3 + $0x80] sm:$0xff] %v1038_v22  ;;  %1134 = vst [vmem:[%s1775_s3 + $0x180] sm:$0xff] %v1070_v23  ;;  %v1041_v28 = vmax.f32 %v977_v24, 0.0  ;;  %v1073_v29 = vmax.f32 %v1009_v25, 0.0  ;;  %v975_v30 = vadd.f32 %v1514_v40, %v568_v26  ;;  %v1007_v31 = vadd.f32 %v1514_v40, %v696_v27 }
 0x10a   :  { %v1273_v32 = vpop.f32.mrf.mxu0  ;;  %v1305_v33 = vpop.f32.mrf.mxu1 }
 0x10b   :  { %1105 = vst [vmem:[%s1775_s3 + $0x98] sm:$0xff] %v1041_v28  ;;  %1137 = vst [vmem:[%s1775_s3 + $0x198] sm:$0xff] %v1073_v29  ;;  %v1039_v34 = vmax.f32 %v975_v30, 0.0  ;;  %v1071_v35 = vmax.f32 %v1007_v31, 0.0  ;;  %v980_v36 = vadd.f32 %v1273_v32, %v1514_v40  ;;  %v1012_v37 = vadd.f32 %v1305_v33, %v1514_v40 }
 0x10c   :  { %v581_v38 = vpop.f32.mrf.mxu0  ;;  %v709_v39 = vpop.f32.mrf.mxu1 }
 0x10d   :  { %1103 = vst [vmem:[%s1775_s3 + $0x88] sm:$0xff] %v1039_v34  ;;  %1135 = vst [vmem:[%s1775_s3 + $0x188] sm:$0xff] %v1071_v35  ;;  %v1044_v41 = vmax.f32 %v980_v36, 0.0  ;;  %v1076_v42 = vmax.f32 %v1012_v37, 0.0  ;;  %v978_v43 = vadd.f32 %v1514_v40, %v581_v38  ;;  %v1010_v44 = vadd.f32 %v1514_v40, %v709_v39 }
 0x10e   :  { %v1274_v45 = vpop.f32.mrf.mxu0  ;;  %v1306_v46 = vpop.f32.mrf.mxu1 }
 0x10f   :  { %1108 = vst [vmem:[%s1775_s3 + $0xb0] sm:$0xff] %v1044_v41  ;;  %1140 = vst [vmem:[%s1775_s3 + $0x1b0] sm:$0xff] %v1076_v42  ;;  %v1042_v47 = vmax.f32 %v978_v43, 0.0  ;;  %v1074_v48 = vmax.f32 %v1010_v44, 0.0  ;;  %v981_v49 = vadd.f32 %v1274_v45, %v1514_v40  ;;  %v1013_v50 = vadd.f32 %v1306_v46, %v1514_v40 }
 0x110   :  { %v584_v51 = vpop.f32.mrf.mxu0  ;;  %v712_v52 = vpop.f32.mrf.mxu1 }
 0x111   :  { %1106 = vst [vmem:[%s1775_s3 + $0xa0] sm:$0xff] %v1042_v47  ;;  %1138 = vst [vmem:[%s1775_s3 + $0x1a0] sm:$0xff] %v1074_v48  ;;  %v1045_v53 = vmax.f32 %v981_v49, 0.0  ;;  %v1077_v54 = vmax.f32 %v1013_v50, 0.0  ;;  %v979_v55 = vadd.f32 %v1514_v40, %v584_v51  ;;  %v1011_v56 = vadd.f32 %v1514_v40, %v712_v52 }
 0x112   :  { %v1277_v57 = vpop.f32.mrf.mxu0  ;;  %v1309_v58 = vpop.f32.mrf.mxu1 }
 0x113   :  { %1109 = vst [vmem:[%s1775_s3 + $0xb8] sm:$0xff] %v1045_v53  ;;  %1141 = vst [vmem:[%s1775_s3 + $0x1b8] sm:$0xff] %v1077_v54  ;;  %v1043_v59 = vmax.f32 %v979_v55, 0.0  ;;  %v1075_v60 = vmax.f32 %v1011_v56, 0.0  ;;  %v984_v61 = vadd.f32 %v1277_v57, %v1514_v40  ;;  %v1016_v62 = vadd.f32 %v1309_v58, %v1514_v40 }
 0x114   :  { %v597_v63 = vpop.f32.mrf.mxu0  ;;  %v725_v0 = vpop.f32.mrf.mxu1 }
 0x115   :  { %1107 = vst [vmem:[%s1775_s3 + $0xa8] sm:$0xff] %v1043_v59  ;;  %1139 = vst [vmem:[%s1775_s3 + $0x1a8] sm:$0xff] %v1075_v60  ;;  %v1048_v1 = vmax.f32 %v984_v61, 0.0  ;;  %v1080_v2 = vmax.f32 %v1016_v62, 0.0  ;;  %v982_v3 = vadd.f32 %v1514_v40, %v597_v63  ;;  %v1014_v4 = vadd.f32 %v1514_v40, %v725_v0 }
 0x116   :  { %v1278_v5 = vpop.f32.mrf.mxu0  ;;  %v1310_v6 = vpop.f32.mrf.mxu1 }
 0x117   :  { %1112 = vst [vmem:[%s1775_s3 + $0xd0] sm:$0xff] %v1048_v1  ;;  %1144 = vst [vmem:[%s1775_s3 + $0x1d0] sm:$0xff] %v1080_v2  ;;  %v1046_v7 = vmax.f32 %v982_v3, 0.0  ;;  %v1078_v8 = vmax.f32 %v1014_v4, 0.0  ;;  %v985_v9 = vadd.f32 %v1278_v5, %v1514_v40  ;;  %v1017_v10 = vadd.f32 %v1310_v6, %v1514_v40 }
 0x118   :  { %v600_v11 = vpop.f32.mrf.mxu0  ;;  %v728_v12 = vpop.f32.mrf.mxu1 }
 0x119   :  { %1110 = vst [vmem:[%s1775_s3 + $0xc0] sm:$0xff] %v1046_v7  ;;  %1142 = vst [vmem:[%s1775_s3 + $0x1c0] sm:$0xff] %v1078_v8  ;;  %v1049_v13 = vmax.f32 %v985_v9, 0.0  ;;  %v1081_v14 = vmax.f32 %v1017_v10, 0.0  ;;  %v983_v15 = vadd.f32 %v1514_v40, %v600_v11  ;;  %v1015_v16 = vadd.f32 %v1514_v40, %v728_v12 }
 0x11a   :  { %v1281_v17 = vpop.f32.mrf.mxu0  ;;  %v1313_v18 = vpop.f32.mrf.mxu1 }
 0x11b   :  { %1113 = vst [vmem:[%s1775_s3 + $0xd8] sm:$0xff] %v1049_v13  ;;  %1145 = vst [vmem:[%s1775_s3 + $0x1d8] sm:$0xff] %v1081_v14  ;;  %v1047_v19 = vmax.f32 %v983_v15, 0.0  ;;  %v1079_v20 = vmax.f32 %v1015_v16, 0.0  ;;  %v988_v21 = vadd.f32 %v1281_v17, %v1514_v40  ;;  %v1020_v22 = vadd.f32 %v1313_v18, %v1514_v40 }
 0x11c   :  { %v613_v23 = vpop.f32.mrf.mxu0  ;;  %v741_v24 = vpop.f32.mrf.mxu1 }
 0x11d   :  { %1111 = vst [vmem:[%s1775_s3 + $0xc8] sm:$0xff] %v1047_v19  ;;  %1143 = vst [vmem:[%s1775_s3 + $0x1c8] sm:$0xff] %v1079_v20  ;;  %v1052_v25 = vmax.f32 %v988_v21, 0.0  ;;  %v1084_v26 = vmax.f32 %v1020_v22, 0.0  ;;  %v986_v27 = vadd.f32 %v1514_v40, %v613_v23  ;;  %v1018_v28 = vadd.f32 %v1514_v40, %v741_v24 }
 0x11e   :  { %v1282_v29 = vpop.f32.mrf.mxu0  ;;  %v1314_v30 = vpop.f32.mrf.mxu1 }
 0x11f   :  { %1116 = vst [vmem:[%s1775_s3 + $0xf0] sm:$0xff] %v1052_v25  ;;  %1148 = vst [vmem:[%s1775_s3 + $0x1f0] sm:$0xff] %v1084_v26  ;;  %v1050_v31 = vmax.f32 %v986_v27, 0.0  ;;  %v1082_v32 = vmax.f32 %v1018_v28, 0.0  ;;  %v989_v33 = vadd.f32 %v1282_v29, %v1514_v40  ;;  %v1021_v34 = vadd.f32 %v1314_v30, %v1514_v40 }
 0x120   :  { %v616_v35 = vpop.f32.mrf.mxu0  ;;  %v744_v36 = vpop.f32.mrf.mxu1 }
 0x121   :  { %1114 = vst [vmem:[%s1775_s3 + $0xe0] sm:$0xff] %v1050_v31  ;;  %1146 = vst [vmem:[%s1775_s3 + $0x1e0] sm:$0xff] %v1082_v32  ;;  %v1053_v37 = vmax.f32 %v989_v33, 0.0  ;;  %v1085_v38 = vmax.f32 %v1021_v34, 0.0  ;;  %v987_v39 = vadd.f32 %v1514_v40, %v616_v35  ;;  %v1019_v41 = vadd.f32 %v1514_v40, %v744_v36 }
 0x123   :  { %1117 = vst [vmem:[%s1775_s3 + $0xf8] sm:$0xff] %v1053_v37  ;;  %1149 = vst [vmem:[%s1775_s3 + $0x1f8] sm:$0xff] %v1085_v38  ;;  %v1051_v42 = vmax.f32 %v987_v39, 0.0  ;;  %v1083_v43 = vmax.f32 %v1019_v41, 0.0 }
 0x125   :  { %1115 = vst [vmem:[%s1775_s3 + $0xe8] sm:$0xff] %v1051_v42  ;;  %1147 = vst [vmem:[%s1775_s3 + $0x1e8] sm:$0xff] %v1083_v43 }

// kernel: pare_forward.4
= control target key start
LH: loop header
LB: loop body
LE: loop exit
PB: predicated region body
PF: predicated region fallthrough
CT: control target
= control target key end

     0   :  { %s1708_s1 = inlined_call_operand.vmem [shape: bf16[128,128], index: 1, kind: input, shape index: {}]   ;;  %s1709_s0 = inlined_call_operand.vmem [shape: bf16[512,128], index: 0, kind: input, shape index: {}]   ;;  %s1710_s2 = inlined_call_operand.vmem [shape: f32[1,128], index: 2, kind: input, shape index: {}]   ;;  %s1711_s3 = inlined_call_operand.vmem [shape: f32[512,128], index: 3, kind: output, shape index: {}]  }
   0x1   :  { %v1267_v0 = vld [vmem:[%s1708_s1 + $0x38] sm:$0xff]   ;;  %v1268_v1 = vld [vmem:[%s1708_s1 + $0x30] sm:$0xff]   ;;  %v1269_v2 = vld [vmem:[%s1708_s1 + $0x28] sm:$0xff]  }
   0x2   :  { %1171 = vmatprep.subr.bf16.mxu0 %v1267_v0  ;;  %1251 = vmatprep.subr.bf16.mxu1 %v1267_v0  ;;  %v1270_v3 = vld [vmem:[%s1708_s1 + $0x20] sm:$0xff]   ;;  %v1271_v6 = vld [vmem:[%s1708_s1 + $0x18] sm:$0xff]   ;;  %v1272_v7 = vld [vmem:[%s1708_s1 + $0x10] sm:$0xff]  }
   0x3   :  { %1172 = vmatpush3.bf16.msra.mxu0 %v1267_v0  ;;  %1259 = vmatpush3.bf16.msra.mxu1 %v1267_v0  ;;  %v1275_v4 = vld [vmem:[%s1709_s0] sm:$0xff]   ;;  %v1273_v8 = vld [vmem:[%s1708_s1 + $0x8] sm:$0xff]   ;;  %v1279_v12 = vld [vmem:[%s1709_s0 + $0x10] sm:$0xff]  }
   0x4   :  { %1173 = vmatprep.subr.bf16.mxu0 %v1268_v1  ;;  %1252 = vmatprep.subr.bf16.mxu1 %v1268_v1  ;;  %v1276_v5 = vld [vmem:[%s1709_s0 + $0x80] sm:$0xff]   ;;  %v1277_v10 = vld [vmem:[%s1709_s0 + $0x8] sm:$0xff]   ;;  %v1280_v13 = vld [vmem:[%s1709_s0 + $0x90] sm:$0xff]  }
   0x5   :  { %1187 = vmatprep.mubr.bf16.mxu0 %v1275_v4  ;;  %1219 = vmatprep.mubr.bf16.mxu1 %v1276_v5  ;;  %v1274_v9 = vld [vmem:[%s1708_s1] sm:$0xff]   ;;  %v1278_v11 = vld [vmem:[%s1709_s0 + $0x88] sm:$0xff]   ;;  %v1281_v14 = vld [vmem:[%s1709_s0 + $0x18] sm:$0xff]  }
   0x6   :  { %v1282_v15 = vld [vmem:[%s1709_s0 + $0x98] sm:$0xff]   ;;  %v1283_v16 = vld [vmem:[%s1709_s0 + $0x20] sm:$0xff]   ;;  %v1285_v18 = vld [vmem:[%s1709_s0 + $0x28] sm:$0xff]  }
   0x7   :  { %1174 = vmatpush3.bf16.msra.mxu0 %v1268_v1  ;;  %1260 = vmatpush3.bf16.msra.mxu1 %v1268_v1  ;;  %v1284_v17 = vld [vmem:[%s1709_s0 + $0xa0] sm:$0xff]   ;;  %v1286_v19 = vld [vmem:[%s1709_s0 + $0xa8] sm:$0xff]   ;;  %v1287_v20 = vld [vmem:[%s1709_s0 + $0x30] sm:$0xff]  }
   0x8   :  { %1175 = vmatprep.subr.bf16.mxu0 %v1269_v2  ;;  %1253 = vmatprep.subr.bf16.mxu1 %v1269_v2  ;;  %v1288_v21 = vld [vmem:[%s1709_s0 + $0xb0] sm:$0xff]   ;;  %v1289_v22 = vld [vmem:[%s1709_s0 + $0x38] sm:$0xff]   ;;  %v1291_v24 = vld [vmem:[%s1709_s0 + $0x40] sm:$0xff]  }
   0x9   :  { %v1290_v23 = vld [vmem:[%s1709_s0 + $0xb8] sm:$0xff]   ;;  %v1292_v25 = vld [vmem:[%s1709_s0 + $0xc0] sm:$0xff]   ;;  %v1293_v26 = vld [vmem:[%s1709_s0 + $0x48] sm:$0xff]  }
   0xa   :  { %v1294_v27 = vld [vmem:[%s1709_s0 + $0xc8] sm:$0xff]   ;;  %v1295_v28 = vld [vmem:[%s1709_s0 + $0x50] sm:$0xff]   ;;  %v1297_v30 = vld [vmem:[%s1709_s0 + $0x58] sm:$0xff]  }
   0xb   :  { %1176 = vmatpush3.bf16.msra.mxu0 %v1269_v2  ;;  %1261 = vmatpush3.bf16.msra.mxu1 %v1269_v2  ;;  %v1296_v29 = vld [vmem:[%s1709_s0 + $0xd0] sm:$0xff]   ;;  %v1298_v31 = vld [vmem:[%s1709_s0 + $0xd8] sm:$0xff]   ;;  %v1299_v32 = vld [vmem:[%s1709_s0 + $0x60] sm:$0xff]  }
   0xc   :  { %1177 = vmatprep.subr.bf16.mxu0 %v1270_v3  ;;  %1254 = vmatprep.subr.bf16.mxu1 %v1270_v3  ;;  %v1300_v33 = vld [vmem:[%s1709_s0 + $0xe0] sm:$0xff]   ;;  %v1301_v34 = vld [vmem:[%s1709_s0 + $0x68] sm:$0xff]   ;;  %v1303_v36 = vld [vmem:[%s1709_s0 + $0x70] sm:$0xff]  }
   0xd   :  { %v1302_v35 = vld [vmem:[%s1709_s0 + $0xe8] sm:$0xff]   ;;  %v1304_v37 = vld [vmem:[%s1709_s0 + $0xf0] sm:$0xff]   ;;  %v1305_v38 = vld [vmem:[%s1709_s0 + $0x78] sm:$0xff]  }
   0xe   :  { %v1306_v39 = vld [vmem:[%s1709_s0 + $0xf8] sm:$0xff]   ;;  %v1450_v40 = vld [vmem:[%s1710_s2] ss:$0 sm:$0xff] }
   0xf   :  { %1178 = vmatpush3.bf16.msra.mxu0 %v1270_v3  ;;  %1262 = vmatpush3.bf16.msra.mxu1 %v1270_v3 }
  0x10   :  { %1179 = vmatprep.subr.bf16.mxu0 %v1271_v6  ;;  %1255 = vmatprep.subr.bf16.mxu1 %v1271_v6 }
  0x13   :  { %1180 = vmatpush3.bf16.msra.mxu0 %v1271_v6  ;;  %1263 = vmatpush3.bf16.msra.mxu1 %v1271_v6 }
  0x14   :  { %1181 = vmatprep.subr.bf16.mxu0 %v1272_v7  ;;  %1256 = vmatprep.subr.bf16.mxu1 %v1272_v7 }
  0x17   :  { %1182 = vmatpush3.bf16.msra.mxu0 %v1272_v7  ;;  %1264 = vmatpush3.bf16.msra.mxu1 %v1272_v7 }
  0x18   :  { %1183 = vmatprep.subr.bf16.mxu0 %v1273_v8  ;;  %1257 = vmatprep.subr.bf16.mxu1 %v1273_v8 }
  0x1b   :  { %1184 = vmatpush3.bf16.msra.mxu0 %v1273_v8  ;;  %1265 = vmatpush3.bf16.msra.mxu1 %v1273_v8 }
  0x1c   :  { %1185 = vmatprep.subr.bf16.mxu0 %v1274_v9  ;;  %1258 = vmatprep.subr.bf16.mxu1 %v1274_v9 }
  0x1f   :  { %1186 = vmatpush3.bf16.msra.mxu0 %v1274_v9  ;;  %1266 = vmatpush3.bf16.msra.mxu1 %v1274_v9 }
  0x22   :  { %1188 = vmatmul.mubr.bf16.vlgmr.msra.gmra.mxu0 %v1277_v10  ;;  %1220 = vmatmul.mubr.bf16.vlgmr.msra.gmra.mxu1 %v1278_v11 }
  0x23   :  { %1191 = vmatprep.mubr.bf16.mxu0 %v1279_v12  ;;  %1223 = vmatprep.mubr.bf16.mxu1 %v1280_v13 }
  0x2a   :  { %1192 = vmatmul.mubr.bf16.gmra.mxu0 %v1281_v14  ;;  %1224 = vmatmul.mubr.bf16.gmra.mxu1 %v1282_v15 }
  0x2b   :  { %1195 = vmatprep.mubr.bf16.mxu0 %v1283_v16  ;;  %1227 = vmatprep.mubr.bf16.mxu1 %v1284_v17 }
  0x32   :  { %1196 = vmatmul.mubr.bf16.gmra.mxu0 %v1285_v18  ;;  %1228 = vmatmul.mubr.bf16.gmra.mxu1 %v1286_v19 }
  0x33   :  { %1199 = vmatprep.mubr.bf16.mxu0 %v1287_v20  ;;  %1231 = vmatprep.mubr.bf16.mxu1 %v1288_v21 }
  0x3a   :  { %1200 = vmatmul.mubr.bf16.gmra.mxu0 %v1289_v22  ;;  %1232 = vmatmul.mubr.bf16.gmra.mxu1 %v1290_v23 }
  0x3b   :  { %1203 = vmatprep.mubr.bf16.mxu0 %v1291_v24  ;;  %1235 = vmatprep.mubr.bf16.mxu1 %v1292_v25 }
  0x42   :  { %1204 = vmatmul.mubr.bf16.gmra.mxu0 %v1293_v26  ;;  %1236 = vmatmul.mubr.bf16.gmra.mxu1 %v1294_v27 }
  0x43   :  { %1207 = vmatprep.mubr.bf16.mxu0 %v1295_v28  ;;  %1239 = vmatprep.mubr.bf16.mxu1 %v1296_v29 }
  0x4a   :  { %1208 = vmatmul.mubr.bf16.gmra.mxu0 %v1297_v30  ;;  %1240 = vmatmul.mubr.bf16.gmra.mxu1 %v1298_v31 }
  0x4b   :  { %1211 = vmatprep.mubr.bf16.mxu0 %v1299_v32  ;;  %1243 = vmatprep.mubr.bf16.mxu1 %v1300_v33 }
  0x52   :  { %1212 = vmatmul.mubr.bf16.gmra.mxu0 %v1301_v34  ;;  %1244 = vmatmul.mubr.bf16.gmra.mxu1 %v1302_v35 }
  0x53   :  { %1215 = vmatprep.mubr.bf16.mxu0 %v1303_v36  ;;  %1247 = vmatprep.mubr.bf16.mxu1 %v1304_v37 }
  0x5a   :  { %1216 = vmatmul.mubr.bf16.gmra.mxu0 %v1305_v38  ;;  %1248 = vmatmul.mubr.bf16.gmra.mxu1 %v1306_v39 }
  0xe2   :  { %v1189_v41 = vpop.f32.mrf.mxu0  ;;  %v1221_v42 = vpop.f32.mrf.mxu1 }
  0xe3   :  { %v960_v43 = vadd.f32 %v1189_v41, %v1450_v40  ;;  %v992_v44 = vadd.f32 %v1221_v42, %v1450_v40 }
  0xe4   :  { %v501_v45 = vpop.f32.mrf.mxu0  ;;  %v629_v46 = vpop.f32.mrf.mxu1 }
  0xe5   :  { %1024 = vst [vmem:[%s1711_s3 + $0x10] sm:$0xff] %v960_v43  ;;  %1056 = vst [vmem:[%s1711_s3 + $0x110] sm:$0xff] %v992_v44  ;;  %v958_v47 = vadd.f32 %v1450_v40, %v501_v45  ;;  %v990_v48 = vadd.f32 %v1450_v40, %v629_v46 }
  0xe6   :  { %v1190_v49 = vpop.f32.mrf.mxu0  ;;  %v1222_v50 = vpop.f32.mrf.mxu1 }
  0xe7   :  { %1022 = vst [vmem:[%s1711_s3] sm:$0xff] %v958_v47  ;;  %1054 = vst [vmem:[%s1711_s3 + $0x100] sm:$0xff] %v990_v48  ;;  %v961_v51 = vadd.f32 %v1190_v49, %v1450_v40  ;;  %v993_v52 = vadd.f32 %v1222_v50, %v1450_v40 }
  0xe8   :  { %v504_v53 = vpop.f32.mrf.mxu0  ;;  %v632_v54 = vpop.f32.mrf.mxu1 }
  0xe9   :  { %1025 = vst [vmem:[%s1711_s3 + $0x18] sm:$0xff] %v961_v51  ;;  %1057 = vst [vmem:[%s1711_s3 + $0x118] sm:$0xff] %v993_v52  ;;  %v959_v55 = vadd.f32 %v1450_v40, %v504_v53  ;;  %v991_v56 = vadd.f32 %v1450_v40, %v632_v54 }
  0xea   :  { %v1193_v57 = vpop.f32.mrf.mxu0  ;;  %v1225_v58 = vpop.f32.mrf.mxu1 }
  0xeb   :  { %1023 = vst [vmem:[%s1711_s3 + $0x8] sm:$0xff] %v959_v55  ;;  %1055 = vst [vmem:[%s1711_s3 + $0x108] sm:$0xff] %v991_v56  ;;  %v964_v59 = vadd.f32 %v1193_v57, %v1450_v40  ;;  %v996_v60 = vadd.f32 %v1225_v58, %v1450_v40 }
  0xec   :  { %v517_v61 = vpop.f32.mrf.mxu0  ;;  %v645_v62 = vpop.f32.mrf.mxu1 }
  0xed   :  { %1028 = vst [vmem:[%s1711_s3 + $0x30] sm:$0xff] %v964_v59  ;;  %1060 = vst [vmem:[%s1711_s3 + $0x130] sm:$0xff] %v996_v60  ;;  %v962_v63 = vadd.f32 %v1450_v40, %v517_v61  ;;  %v994_v0 = vadd.f32 %v1450_v40, %v645_v62 }
  0xee   :  { %v1194_v1 = vpop.f32.mrf.mxu0  ;;  %v1226_v2 = vpop.f32.mrf.mxu1 }
  0xef   :  { %1026 = vst [vmem:[%s1711_s3 + $0x20] sm:$0xff] %v962_v63  ;;  %1058 = vst [vmem:[%s1711_s3 + $0x120] sm:$0xff] %v994_v0  ;;  %v965_v3 = vadd.f32 %v1194_v1, %v1450_v40  ;;  %v997_v4 = vadd.f32 %v1226_v2, %v1450_v40 }
  0xf0   :  { %v520_v5 = vpop.f32.mrf.mxu0  ;;  %v648_v6 = vpop.f32.mrf.mxu1 }
  0xf1   :  { %1029 = vst [vmem:[%s1711_s3 + $0x38] sm:$0xff] %v965_v3  ;;  %1061 = vst [vmem:[%s1711_s3 + $0x138] sm:$0xff] %v997_v4  ;;  %v963_v7 = vadd.f32 %v1450_v40, %v520_v5  ;;  %v995_v8 = vadd.f32 %v1450_v40, %v648_v6 }
  0xf2   :  { %v1197_v9 = vpop.f32.mrf.mxu0  ;;  %v1229_v10 = vpop.f32.mrf.mxu1 }
  0xf3   :  { %1027 = vst [vmem:[%s1711_s3 + $0x28] sm:$0xff] %v963_v7  ;;  %1059 = vst [vmem:[%s1711_s3 + $0x128] sm:$0xff] %v995_v8  ;;  %v968_v11 = vadd.f32 %v1197_v9, %v1450_v40  ;;  %v1000_v12 = vadd.f32 %v1229_v10, %v1450_v40 }
  0xf4   :  { %v533_v13 = vpop.f32.mrf.mxu0  ;;  %v661_v14 = vpop.f32.mrf.mxu1 }
  0xf5   :  { %1032 = vst [vmem:[%s1711_s3 + $0x50] sm:$0xff] %v968_v11  ;;  %1064 = vst [vmem:[%s1711_s3 + $0x150] sm:$0xff] %v1000_v12  ;;  %v966_v15 = vadd.f32 %v1450_v40, %v533_v13  ;;  %v998_v16 = vadd.f32 %v1450_v40, %v661_v14 }
  0xf6   :  { %v1198_v17 = vpop.f32.mrf.mxu0  ;;  %v1230_v18 = vpop.f32.mrf.mxu1 }
  0xf7   :  { %1030 = vst [vmem:[%s1711_s3 + $0x40] sm:$0xff] %v966_v15  ;;  %1062 = vst [vmem:[%s1711_s3 + $0x140] sm:$0xff] %v998_v16  ;;  %v969_v19 = vadd.f32 %v1198_v17, %v1450_v40  ;;  %v1001_v20 = vadd.f32 %v1230_v18, %v1450_v40 }
  0xf8   :  { %v536_v21 = vpop.f32.mrf.mxu0  ;;  %v664_v22 = vpop.f32.mrf.mxu1 }
  0xf9   :  { %1033 = vst [vmem:[%s1711_s3 + $0x58] sm:$0xff] %v969_v19  ;;  %1065 = vst [vmem:[%s1711_s3 + $0x158] sm:$0xff] %v1001_v20  ;;  %v967_v23 = vadd.f32 %v1450_v40, %v536_v21  ;;  %v999_v24 = vadd.f32 %v1450_v40, %v664_v22 }
  0xfa   :  { %v1201_v25 = vpop.f32.mrf.mxu0  ;;  %v1233_v26 = vpop.f32.mrf.mxu1 }
  0xfb   :  { %1031 = vst [vmem:[%s1711_s3 + $0x48] sm:$0xff] %v967_v23  ;;  %1063 = vst [vmem:[%s1711_s3 + $0x148] sm:$0xff] %v999_v24  ;;  %v972_v27 = vadd.f32 %v1201_v25, %v1450_v40  ;;  %v1004_v28 = vadd.f32 %v1233_v26, %v1450_v40 }
  0xfc   :  { %v549_v29 = vpop.f32.mrf.mxu0  ;;  %v677_v30 = vpop.f32.mrf.mxu1 }
  0xfd   :  { %1036 = vst [vmem:[%s1711_s3 + $0x70] sm:$0xff] %v972_v27  ;;  %1068 = vst [vmem:[%s1711_s3 + $0x170] sm:$0xff] %v1004_v28  ;;  %v970_v31 = vadd.f32 %v1450_v40, %v549_v29  ;;  %v1002_v32 = vadd.f32 %v1450_v40, %v677_v30 }
  0xfe   :  { %v1202_v33 = vpop.f32.mrf.mxu0  ;;  %v1234_v34 = vpop.f32.mrf.mxu1 }
  0xff   :  { %1034 = vst [vmem:[%s1711_s3 + $0x60] sm:$0xff] %v970_v31  ;;  %1066 = vst [vmem:[%s1711_s3 + $0x160] sm:$0xff] %v1002_v32  ;;  %v973_v35 = vadd.f32 %v1202_v33, %v1450_v40  ;;  %v1005_v36 = vadd.f32 %v1234_v34, %v1450_v40 }
 0x100   :  { %v552_v37 = vpop.f32.mrf.mxu0  ;;  %v680_v38 = vpop.f32.mrf.mxu1 }
 0x101   :  { %1037 = vst [vmem:[%s1711_s3 + $0x78] sm:$0xff] %v973_v35  ;;  %1069 = vst [vmem:[%s1711_s3 + $0x178] sm:$0xff] %v1005_v36  ;;  %v971_v39 = vadd.f32 %v1450_v40, %v552_v37  ;;  %v1003_v41 = vadd.f32 %v1450_v40, %v680_v38 }
 0x102   :  { %v1205_v42 = vpop.f32.mrf.mxu0  ;;  %v1237_v43 = vpop.f32.mrf.mxu1 }
 0x103   :  { %1035 = vst [vmem:[%s1711_s3 + $0x68] sm:$0xff] %v971_v39  ;;  %1067 = vst [vmem:[%s1711_s3 + $0x168] sm:$0xff] %v1003_v41  ;;  %v976_v44 = vadd.f32 %v1205_v42, %v1450_v40  ;;  %v1008_v45 = vadd.f32 %v1237_v43, %v1450_v40 }
 0x104   :  { %v565_v46 = vpop.f32.mrf.mxu0  ;;  %v693_v47 = vpop.f32.mrf.mxu1 }
 0x105   :  { %1040 = vst [vmem:[%s1711_s3 + $0x90] sm:$0xff] %v976_v44  ;;  %1072 = vst [vmem:[%s1711_s3 + $0x190] sm:$0xff] %v1008_v45  ;;  %v974_v48 = vadd.f32 %v1450_v40, %v565_v46  ;;  %v1006_v49 = vadd.f32 %v1450_v40, %v693_v47 }
 0x106   :  { %v1206_v50 = vpop.f32.mrf.mxu0  ;;  %v1238_v51 = vpop.f32.mrf.mxu1 }
 0x107   :  { %1038 = vst [vmem:[%s1711_s3 + $0x80] sm:$0xff] %v974_v48  ;;  %1070 = vst [vmem:[%s1711_s3 + $0x180] sm:$0xff] %v1006_v49  ;;  %v977_v52 = vadd.f32 %v1206_v50, %v1450_v40  ;;  %v1009_v53 = vadd.f32 %v1238_v51, %v1450_v40 }
 0x108   :  { %v568_v54 = vpop.f32.mrf.mxu0  ;;  %v696_v55 = vpop.f32.mrf.mxu1 }
 0x109   :  { %1041 = vst [vmem:[%s1711_s3 + $0x98] sm:$0xff] %v977_v52  ;;  %1073 = vst [vmem:[%s1711_s3 + $0x198] sm:$0xff] %v1009_v53  ;;  %v975_v56 = vadd.f32 %v1450_v40, %v568_v54  ;;  %v1007_v57 = vadd.f32 %v1450_v40, %v696_v55 }
 0x10a   :  { %v1209_v58 = vpop.f32.mrf.mxu0  ;;  %v1241_v59 = vpop.f32.mrf.mxu1 }
 0x10b   :  { %1039 = vst [vmem:[%s1711_s3 + $0x88] sm:$0xff] %v975_v56  ;;  %1071 = vst [vmem:[%s1711_s3 + $0x188] sm:$0xff] %v1007_v57  ;;  %v980_v60 = vadd.f32 %v1209_v58, %v1450_v40  ;;  %v1012_v61 = vadd.f32 %v1241_v59, %v1450_v40 }
 0x10c   :  { %v581_v62 = vpop.f32.mrf.mxu0  ;;  %v709_v63 = vpop.f32.mrf.mxu1 }
 0x10d   :  { %1044 = vst [vmem:[%s1711_s3 + $0xb0] sm:$0xff] %v980_v60  ;;  %1076 = vst [vmem:[%s1711_s3 + $0x1b0] sm:$0xff] %v1012_v61  ;;  %v978_v0 = vadd.f32 %v1450_v40, %v581_v62  ;;  %v1010_v1 = vadd.f32 %v1450_v40, %v709_v63 }
 0x10e   :  { %v1210_v2 = vpop.f32.mrf.mxu0  ;;  %v1242_v3 = vpop.f32.mrf.mxu1 }
 0x10f   :  { %1042 = vst [vmem:[%s1711_s3 + $0xa0] sm:$0xff] %v978_v0  ;;  %1074 = vst [vmem:[%s1711_s3 + $0x1a0] sm:$0xff] %v1010_v1  ;;  %v981_v4 = vadd.f32 %v1210_v2, %v1450_v40  ;;  %v1013_v5 = vadd.f32 %v1242_v3, %v1450_v40 }
 0x110   :  { %v584_v6 = vpop.f32.mrf.mxu0  ;;  %v712_v7 = vpop.f32.mrf.mxu1 }
 0x111   :  { %1045 = vst [vmem:[%s1711_s3 + $0xb8] sm:$0xff] %v981_v4  ;;  %1077 = vst [vmem:[%s1711_s3 + $0x1b8] sm:$0xff] %v1013_v5  ;;  %v979_v8 = vadd.f32 %v1450_v40, %v584_v6  ;;  %v1011_v9 = vadd.f32 %v1450_v40, %v712_v7 }
 0x112   :  { %v1213_v10 = vpop.f32.mrf.mxu0  ;;  %v1245_v11 = vpop.f32.mrf.mxu1 }
 0x113   :  { %1043 = vst [vmem:[%s1711_s3 + $0xa8] sm:$0xff] %v979_v8  ;;  %1075 = vst [vmem:[%s1711_s3 + $0x1a8] sm:$0xff] %v1011_v9  ;;  %v984_v12 = vadd.f32 %v1213_v10, %v1450_v40  ;;  %v1016_v13 = vadd.f32 %v1245_v11, %v1450_v40 }
 0x114   :  { %v597_v14 = vpop.f32.mrf.mxu0  ;;  %v725_v15 = vpop.f32.mrf.mxu1 }
 0x115   :  { %1048 = vst [vmem:[%s1711_s3 + $0xd0] sm:$0xff] %v984_v12  ;;  %1080 = vst [vmem:[%s1711_s3 + $0x1d0] sm:$0xff] %v1016_v13  ;;  %v982_v16 = vadd.f32 %v1450_v40, %v597_v14  ;;  %v1014_v17 = vadd.f32 %v1450_v40, %v725_v15 }
 0x116   :  { %v1214_v18 = vpop.f32.mrf.mxu0  ;;  %v1246_v19 = vpop.f32.mrf.mxu1 }
 0x117   :  { %1046 = vst [vmem:[%s1711_s3 + $0xc0] sm:$0xff] %v982_v16  ;;  %1078 = vst [vmem:[%s1711_s3 + $0x1c0] sm:$0xff] %v1014_v17  ;;  %v985_v20 = vadd.f32 %v1214_v18, %v1450_v40  ;;  %v1017_v21 = vadd.f32 %v1246_v19, %v1450_v40 }
 0x118   :  { %v600_v22 = vpop.f32.mrf.mxu0  ;;  %v728_v23 = vpop.f32.mrf.mxu1 }
 0x119   :  { %1049 = vst [vmem:[%s1711_s3 + $0xd8] sm:$0xff] %v985_v20  ;;  %1081 = vst [vmem:[%s1711_s3 + $0x1d8] sm:$0xff] %v1017_v21  ;;  %v983_v24 = vadd.f32 %v1450_v40, %v600_v22  ;;  %v1015_v25 = vadd.f32 %v1450_v40, %v728_v23 }
 0x11a   :  { %v1217_v26 = vpop.f32.mrf.mxu0  ;;  %v1249_v27 = vpop.f32.mrf.mxu1 }
 0x11b   :  { %1047 = vst [vmem:[%s1711_s3 + $0xc8] sm:$0xff] %v983_v24  ;;  %1079 = vst [vmem:[%s1711_s3 + $0x1c8] sm:$0xff] %v1015_v25  ;;  %v988_v28 = vadd.f32 %v1217_v26, %v1450_v40  ;;  %v1020_v29 = vadd.f32 %v1249_v27, %v1450_v40 }
 0x11c   :  { %v613_v30 = vpop.f32.mrf.mxu0  ;;  %v741_v31 = vpop.f32.mrf.mxu1 }
 0x11d   :  { %1052 = vst [vmem:[%s1711_s3 + $0xf0] sm:$0xff] %v988_v28  ;;  %1084 = vst [vmem:[%s1711_s3 + $0x1f0] sm:$0xff] %v1020_v29  ;;  %v986_v32 = vadd.f32 %v1450_v40, %v613_v30  ;;  %v1018_v33 = vadd.f32 %v1450_v40, %v741_v31 }
 0x11e   :  { %v1218_v34 = vpop.f32.mrf.mxu0  ;;  %v1250_v35 = vpop.f32.mrf.mxu1 }
 0x11f   :  { %1050 = vst [vmem:[%s1711_s3 + $0xe0] sm:$0xff] %v986_v32  ;;  %1082 = vst [vmem:[%s1711_s3 + $0x1e0] sm:$0xff] %v1018_v33  ;;  %v989_v36 = vadd.f32 %v1218_v34, %v1450_v40  ;;  %v1021_v37 = vadd.f32 %v1250_v35, %v1450_v40 }
 0x120   :  { %v616_v38 = vpop.f32.mrf.mxu0  ;;  %v744_v39 = vpop.f32.mrf.mxu1 }
 0x121   :  { %1053 = vst [vmem:[%s1711_s3 + $0xf8] sm:$0xff] %v989_v36  ;;  %1085 = vst [vmem:[%s1711_s3 + $0x1f8] sm:$0xff] %v1021_v37  ;;  %v987_v41 = vadd.f32 %v1450_v40, %v616_v38  ;;  %v1019_v42 = vadd.f32 %v1450_v40, %v744_v39 }
 0x123   :  { %1051 = vst [vmem:[%s1711_s3 + $0xe8] sm:$0xff] %v987_v41  ;;  %1083 = vst [vmem:[%s1711_s3 + $0x1e8] sm:$0xff] %v1019_v42 }

// kernel: pare_forward.5
= control target key start
LH: loop header
LB: loop body
LE: loop exit
PB: predicated region body
PF: predicated region fallthrough
CT: control target
= control target key end

     0   :  { %s1081_s9 = smov 0   ;;  %s1451_s0 = inlined_call_operand.vmem [shape: f32[2,256,128], index: 0, kind: input, shape index: {}]   ;;  %s1452_s1 = inlined_call_operand.vmem [shape: bf16[2,256,40], index: 1, kind: input, shape index: {}]   ;;  %s1453_s2 = inlined_call_operand.vmem [shape: f32[2,128,40], index: 2, kind: output, shape index: {}]  }
   0x1 LB: > { %s826_s10 = sadd.s32 4294967295, %s1064_s9   ;;  %p830_p0 = scmp.ge.s32.totalorder %s1064_s9, 1  ;;  %s1064_s9 = sphi %s1081_s9, %s12_s9  }
   0x2   : > { %p122_p1 = scmp.lt.s32.totalorder %s1064_s9, 3 }
   0x4   : > { %p123_p2 = pnand %p830_p0, %p122_p1 }
   0x5   : > { %p149_p3 = scmp.lt.s32.totalorder (!%p123_p2), %s826_s10, 1 }
   0x6   : > { %126 = sbr.rel (%p123_p2) target bundleno = 721 (0x2d1), region = 28 }
   0xb   : > { %s1455_s10 = smov (!%p149_p3, %s826_s10), 1  ;;  %vm742_vm0 = vcmask 326656  }
   0xc   : > { %s855_s11 = sshll.u32 %s1455_s10, 8  ;;  %s856_s15 = sshll.u32 %s1455_s10, 7 }
   0xd   : > { %s1095_s14 = scalar_lea.vmem %s1451_s0, %s855_s11  ;;  %s1231_s18 = scalar_lea.vmem %s1452_s1, %s856_s15 }
   0xe   : > { %v181_v0 = vld [vmem:[%s1095_s14 + $0x80] sm:$0xff]  ;;  %v182_v2 = vld [vmem:[%s1095_s14 + $0x88] sm:$0xff]  ;;  %v183_v4 = vld [vmem:[%s1095_s14 + $0x90] sm:$0xff]  ;;  %s1414_s21 = scalar_lea.vmem %s1453_s2, %s856_s15 }
   0xf   : > { %v165_v1 = vld [vmem:[%s1095_s14] sm:$0xff]  ;;  %229 = vxpose.xlu1.b32.start [1/16] %v181_v0, 128  ;;  %v166_v3 = vld [vmem:[%s1095_s14 + $0x8] sm:$0xff]  ;;  %v167_v5 = vld [vmem:[%s1095_s14 + $0x10] sm:$0xff] }
  0x10   : > { %197 = vxpose.xlu0.b32.start [1/16] %v165_v1, 128  ;;  %v184_v6 = vld [vmem:[%s1095_s14 + $0x98] sm:$0xff]  ;;  %v185_v8 = vld [vmem:[%s1095_s14 + $0xa0] sm:$0xff]  ;;  %v186_v10 = vld [vmem:[%s1095_s14 + $0xa8] sm:$0xff] }
  0x11   : > { %v168_v7 = vld [vmem:[%s1095_s14 + $0x18] sm:$0xff]  ;;  %v169_v9 = vld [vmem:[%s1095_s14 + $0x20] sm:$0xff]  ;;  %v170_v11 = vld [vmem:[%s1095_s14 + $0x28] sm:$0xff] }
  0x12   : > { %v187_v12 = vld [vmem:[%s1095_s14 + $0xb0] sm:$0xff]  ;;  %v188_v14 = vld [vmem:[%s1095_s14 + $0xb8] sm:$0xff]  ;;  %v189_v16 = vld [vmem:[%s1095_s14 + $0xc0] sm:$0xff] }
  0x13   : > { %230 = vxpose.xlu1.b32.cont [2/16] %v182_v2, 128  ;;  %v171_v13 = vld [vmem:[%s1095_s14 + $0x30] sm:$0xff]  ;;  %v172_v15 = vld [vmem:[%s1095_s14 + $0x38] sm:$0xff]  ;;  %v173_v17 = vld [vmem:[%s1095_s14 + $0x40] sm:$0xff] }
  0x14   : > { %198 = vxpose.xlu0.b32.cont [2/16] %v166_v3, 128  ;;  %v190_v18 = vld [vmem:[%s1095_s14 + $0xc8] sm:$0xff]  ;;  %v191_v20 = vld [vmem:[%s1095_s14 + $0xd0] sm:$0xff]  ;;  %v192_v22 = vld [vmem:[%s1095_s14 + $0xd8] sm:$0xff] }
  0x15   : > { %v174_v19 = vld [vmem:[%s1095_s14 + $0x48] sm:$0xff]  ;;  %v175_v21 = vld [vmem:[%s1095_s14 + $0x50] sm:$0xff]  ;;  %v176_v23 = vld [vmem:[%s1095_s14 + $0x58] sm:$0xff] }
  0x16   : > { %v193_v24 = vld [vmem:[%s1095_s14 + $0xe0] sm:$0xff]  ;;  %v194_v26 = vld [vmem:[%s1095_s14 + $0xe8] sm:$0xff]  ;;  %v195_v28 = vld [vmem:[%s1095_s14 + $0xf0] sm:$0xff] }
  0x17   : > { %231 = vxpose.xlu1.b32.cont [3/16] %v183_v4, 128  ;;  %v177_v25 = vld [vmem:[%s1095_s14 + $0x60] sm:$0xff]  ;;  %v178_v27 = vld [vmem:[%s1095_s14 + $0x68] sm:$0xff]  ;;  %v179_v29 = vld [vmem:[%s1095_s14 + $0x70] sm:$0xff] }
  0x18   : > { %199 = vxpose.xlu0.b32.cont [3/16] %v167_v5, 128  ;;  %v196_v30 = vld [vmem:[%s1095_s14 + $0xf8] sm:$0xff] }
  0x19   : > { %v180_v31 = vld [vmem:[%s1095_s14 + $0x78] sm:$0xff] }
  0x1b   : > { %232 = vxpose.xlu1.b32.cont [4/16] %v184_v6, 128 }
  0x1c   : > { %200 = vxpose.xlu0.b32.cont [4/16] %v168_v7, 128 }
  0x1f   : > { %233 = vxpose.xlu1.b32.cont [5/16] %v185_v8, 128 }
  0x20   : > { %201 = vxpose.xlu0.b32.cont [5/16] %v169_v9, 128 }
  0x23   : > { %234 = vxpose.xlu1.b32.cont [6/16] %v186_v10, 128 }
  0x24   : > { %202 = vxpose.xlu0.b32.cont [6/16] %v170_v11, 128 }
  0x27   : > { %235 = vxpose.xlu1.b32.cont [7/16] %v187_v12, 128 }
  0x28   : > { %203 = vxpose.xlu0.b32.cont [7/16] %v171_v13, 128 }
  0x2b   : > { %236 = vxpose.xlu1.b32.cont [8/16] %v188_v14, 128 }
  0x2c   : > { %204 = vxpose.xlu0.b32.cont [8/16] %v172_v15, 128 }
  0x2f   : > { %237 = vxpose.xlu1.b32.cont [9/16] %v189_v16, 128  ;;  %v946_v16 = vld [vmem:[%s1231_s18 + $0x78] sm:$0xff]  }
  0x30   : > { %205 = vxpose.xlu0.b32.cont [9/16] %v173_v17, 128  ;;  %v947_v17 = vld [vmem:[%s1231_s18 + $0x38] sm:$0xff]   ;;  %858 = vmatprep.subr.bf16.mxu0 %v946_v16 }
  0x31   : > { %922 = vmatprep.subr.bf16.mxu1 %v946_v16  ;;  %859 = vmatpush3.bf16.msra.mxu0 %v947_v17 }
  0x32   : > { %930 = vmatpush3.bf16.msra.mxu1 %v947_v17  ;;  %v956_v17 = vld [vmem:[%s1231_s18 + $0x50] sm:$0xff]  }
  0x33   : > { %238 = vxpose.xlu1.b32.cont [10/16] %v190_v18, 128  ;;  %v948_v18 = vld [vmem:[%s1231_s18 + $0x70] sm:$0xff]  }
  0x34   : > { %206 = vxpose.xlu0.b32.cont [10/16] %v174_v19, 128  ;;  %v949_v19 = vld [vmem:[%s1231_s18 + $0x30] sm:$0xff]   ;;  %860 = vmatprep.subr.bf16.mxu0 %v948_v18 }
  0x35   : > { %923 = vmatprep.subr.bf16.mxu1 %v948_v18  ;;  %861 = vmatpush3.bf16.msra.mxu0 %v949_v19 }
  0x36   : > { %931 = vmatpush3.bf16.msra.mxu1 %v949_v19 }
  0x37   : > { %239 = vxpose.xlu1.b32.cont [11/16] %v191_v20, 128  ;;  %v950_v20 = vld [vmem:[%s1231_s18 + $0x68] sm:$0xff]  }
  0x38   : > { %207 = vxpose.xlu0.b32.cont [11/16] %v175_v21, 128  ;;  %862 = vmatprep.subr.bf16.mxu0 %v950_v20 }
  0x39   : > { %924 = vmatprep.subr.bf16.mxu1 %v950_v20 }
  0x3b   : > { %240 = vxpose.xlu1.b32.cont [12/16] %v192_v22, 128 }
  0x3c   : > { %208 = vxpose.xlu0.b32.cont [12/16] %v176_v23, 128 }
  0x3f   : > { %241 = vxpose.xlu1.b32.cont [13/16] %v193_v24, 128 }
  0x40   : > { %209 = vxpose.xlu0.b32.cont [13/16] %v177_v25, 128 }
  0x43   : > { %242 = vxpose.xlu1.b32.cont [14/16] %v194_v26, 128 }
  0x44   : > { %210 = vxpose.xlu0.b32.cont [14/16] %v178_v27, 128 }
  0x47   : > { %243 = vxpose.xlu1.b32.cont [15/16] %v195_v28, 128 }
  0x48   : > { %211 = vxpose.xlu0.b32.cont [15/16] %v179_v29, 128 }
  0x4b   : > { %244 = vxpose.xlu1.b32.end [16/16] %v196_v30, 128 }
  0x4c   : > { %212 = vxpose.xlu0.b32.end [16/16] %v180_v31, 128 }
  0x8b   : > { %v1129_v32 = vpop.trf.xlu1 }
  0x8c   : > { %v1131_v33 = vpop.trf.xlu0 }
  0x8d   : > { %v261_v34 = vmax.f32 %v1131_v33, %v1129_v32 }
  0x8f   : > { %262 = vmax.xlane.f32.xlu0 %v261_v34  ;;  %v1135_v35 = vpop.trf.xlu1 }
  0x90   : > { %v1137_v36 = vpop.trf.xlu0 }
  0x91   : > { %v264_v37 = vmax.f32 %v1137_v36, %v1135_v35 }
  0x93   : > { %265 = vmax.xlane.f32.xlu1 %v264_v37  ;;  %v1141_v38 = vpop.trf.xlu1 }
  0x94   : > { %v1143_v39 = vpop.trf.xlu0 }
  0x95   : > { %v267_v40 = vmax.f32 %v1143_v39, %v1141_v38 }
  0x97   : > { %268 = vmax.xlane.f32.xlu0 %v267_v40  ;;  %v1147_v41 = vpop.trf.xlu1 }
  0x98   : > { %v1149_v42 = vpop.trf.xlu0 }
  0x99   : > { %v270_v59 = vmax.f32 %v1149_v42, %v1147_v41 }
  0x9b   : > { %v1151_v43 = vpop.trf.xlu1 }
  0x9c   : > { %v1153_v44 = vpop.trf.xlu0 }
  0x9d   : > { %v273_v63 = vmax.f32 %v1153_v44, %v1151_v43 }
  0x9f   : > { %v1155_v45 = vpop.trf.xlu1 }
  0xa0   : > { %v1157_v46 = vpop.trf.xlu0 }
  0xa1   : > { %v276_v3 = vmax.f32 %v1157_v46, %v1155_v45 }
  0xa3   : > { %v1159_v47 = vpop.trf.xlu1 }
  0xa4   : > { %v1161_v48 = vpop.trf.xlu0 }
  0xa5   : > { %v279_v7 = vmax.f32 %v1161_v48, %v1159_v47 }
  0xa7   : > { %v1163_v49 = vpop.trf.xlu1 }
  0xa8   : > { %v1165_v50 = vpop.trf.xlu0 }
  0xa9   : > { %v282_v11 = vmax.f32 %v1165_v50, %v1163_v49 }
  0xab   : > { %v1167_v51 = vpop.trf.xlu1 }
  0xac   : > { %v1169_v52 = vpop.trf.xlu0 }
  0xad   : > { %v285_v53 = vmax.f32 %v1169_v52, %v1167_v51 }
  0xaf   : > { %286 = vmax.xlane.f32.xlu1 %v285_v53  ;;  %v1173_v54 = vpop.trf.xlu1 }
  0xb0   : > { %v1175_v55 = vpop.trf.xlu0 }
  0xb1   : > { %v288_v56 = vmax.f32 %v1175_v55, %v1173_v54 }
  0xb3   : > { %289 = vmax.xlane.f32.xlu1 %v288_v56  ;;  %v1179_v57 = vpop.trf.xlu1 }
  0xb4   : > { %v1181_v58 = vpop.trf.xlu0 }
  0xb5   : > { %v291_v60 = vmax.f32 %v1181_v58, %v1179_v57 }
  0xb7   : > { %271 = vmax.xlane.f32.xlu1 %v270_v59  ;;  %292 = vmax.xlane.f32.xlu0 %v291_v60  ;;  %v1187_v61 = vpop.trf.xlu1  ;;  %v951_v59 = vld [vmem:[%s1231_s18 + $0x28] sm:$0xff]   ;;  %v952_v60 = vld [vmem:[%s1231_s18 + $0x60] sm:$0xff]  }
  0xb8   : > { %v1189_v62 = vpop.trf.xlu0  ;;  %863 = vmatpush3.bf16.msra.mxu0 %v951_v59  ;;  %932 = vmatpush3.bf16.msra.mxu1 %v951_v59 }
  0xb9   : > { %v294_v0 = vmax.f32 %v1189_v62, %v1187_v61  ;;  %864 = vmatprep.subr.bf16.mxu0 %v952_v60  ;;  %925 = vmatprep.subr.bf16.mxu1 %v952_v60 }
  0xbb   : > { %274 = vmax.xlane.f32.xlu0 %v273_v63  ;;  %295 = vmax.xlane.f32.xlu1 %v294_v0  ;;  %v1195_v1 = vpop.trf.xlu1 }
  0xbc   : > { %v1197_v2 = vpop.trf.xlu0 }
  0xbd   : > { %v297_v4 = vmax.f32 %v1197_v2, %v1195_v1 }
  0xbf   : > { %277 = vmax.xlane.f32.xlu1 %v276_v3  ;;  %298 = vmax.xlane.f32.xlu0 %v297_v4  ;;  %v1203_v5 = vpop.trf.xlu1 }
  0xc0   : > { %v1205_v6 = vpop.trf.xlu0 }
  0xc1   : > { %v300_v8 = vmax.f32 %v1205_v6, %v1203_v5 }
  0xc3   : > { %280 = vmax.xlane.f32.xlu0 %v279_v7  ;;  %301 = vmax.xlane.f32.xlu1 %v300_v8  ;;  %v1211_v9 = vpop.trf.xlu1 }
  0xc4   : > { %v1213_v10 = vpop.trf.xlu0 }
  0xc5   : > { %v303_v12 = vmax.f32 %v1213_v10, %v1211_v9 }
  0xc7   : > { %283 = vmax.xlane.f32.xlu1 %v282_v11  ;;  %304 = vmax.xlane.f32.xlu0 %v303_v12  ;;  %v1219_v13 = vpop.trf.xlu1  ;;  %v954_v11 = vld [vmem:[%s1231_s18 + $0x58] sm:$0xff]  }
  0xc8   : > { %v1221_v14 = vpop.trf.xlu0 }
  0xc9   : > { %v306_v15 = vmax.f32 %v1221_v14, %v1219_v13 }
  0xcb   : > { %307 = vmax.xlane.f32.xlu1 %v306_v15 }
 0x118   : > { %v263_v21 = vpop.xlane.xlu0 %262 }
 0x119   : > { %v309_v22 = vsub.f32 %v1131_v33, %v263_v21  ;;  %v310_v23 = vsub.f32 %v1129_v32, %v263_v21 }
 0x11b   : > { %v341_v24 = vmul.f32 1.442695, %v309_v22  ;;  %v343_v25 = vmul.f32 1.442695, %v310_v23  ;;  %v957_v22 = vld [vmem:[%s1231_s18 + $0x10] sm:$0xff]   ;;  %v958_v23 = vld [vmem:[%s1231_s18 + $0x48] sm:$0xff]  }
 0x11c   : > { %v266_v26 = vpop.xlane.xlu1 %265 }
 0x11d   : > { %962 = vpow2.f32 %v341_v24  ;;  %v311_v27 = vsub.f32 %v1137_v36, %v266_v26  ;;  %v312_v28 = vsub.f32 %v1135_v35, %v266_v26 }
 0x11e   : > { %964 = vpow2.f32 %v343_v25 }
 0x11f   : > { %v345_v29 = vmul.f32 1.442695, %v311_v27  ;;  %v347_v30 = vmul.f32 1.442695, %v312_v28 }
 0x120   : > { %v269_v37 = vpop.xlane.xlu0 %268 }
 0x121   : > { %966 = vpow2.f32 %v345_v29  ;;  %v313_v40 = vsub.f32 %v1143_v39, %v269_v37  ;;  %v314_v53 = vsub.f32 %v1141_v38, %v269_v37  ;;  %v953_v38 = vld [vmem:[%s1231_s18 + $0x20] sm:$0xff]  }
 0x122   : > { %968 = vpow2.f32 %v347_v30  ;;  %865 = vmatpush3.bf16.msra.mxu0 %v953_v38  ;;  %933 = vmatpush3.bf16.msra.mxu1 %v953_v38  ;;  %v959_v30 = vld [vmem:[%s1231_s18 + $0x8] sm:$0xff]  }
 0x123   : > { %v349_v3 = vmul.f32 1.442695, %v313_v40  ;;  %v351_v39 = vmul.f32 1.442695, %v314_v53  ;;  %866 = vmatprep.subr.bf16.mxu0 %v954_v11  ;;  %926 = vmatprep.subr.bf16.mxu1 %v954_v11 }
 0x12a   : > { %v1242_v31 = vpop.eup %962 }
 0x12b   : > { %v1244_v33 = vpop.eup %964 }
 0x12c   : > { %v405_v32 = vadd.f32 %v1244_v33, %v1242_v31 }
 0x12e   : > { %v1248_v34 = vpop.eup %966  ;;  %406 = vadd.xlane.f32.xlu0 %v405_v32  ;;  %v960_v32 = vld [vmem:[%s1231_s18 + $0x40] sm:$0xff]  }
 0x12f   : > { %v1250_v36 = vpop.eup %968 }
 0x130   : > { %v408_v35 = vadd.f32 %v1250_v36, %v1248_v34 }
 0x132   : > { %409 = vadd.xlane.f32.xlu1 %v408_v35 }
 0x138   : > { %v287_v56 = vpop.xlane.xlu1 %286 }
 0x139   : > { %v325_v63 = vsub.f32 %v1169_v52, %v287_v56  ;;  %v326_v0 = vsub.f32 %v1167_v51, %v287_v56  ;;  %v955_v51 = vld [vmem:[%s1231_s18 + $0x18] sm:$0xff]  }
 0x13a   : > { %867 = vmatpush3.bf16.msra.mxu0 %v955_v51  ;;  %934 = vmatpush3.bf16.msra.mxu1 %v955_v51 }
 0x13b   : > { %v373_v4 = vmul.f32 1.442695, %v325_v63  ;;  %v375_v7 = vmul.f32 1.442695, %v326_v0  ;;  %868 = vmatprep.subr.bf16.mxu0 %v956_v17  ;;  %927 = vmatprep.subr.bf16.mxu1 %v956_v17  ;;  %v961_v63 = vld [vmem:[%s1231_s18] sm:$0xff]  }
 0x13c   : > { %v290_v8 = vpop.xlane.xlu1 %289 }
 0x13d   : > { %970 = vpow2.f32 %v373_v4  ;;  %v327_v12 = vsub.f32 %v1175_v55, %v290_v8  ;;  %v328_v52 = vsub.f32 %v1173_v54, %v290_v8 }
 0x13e   : > { %972 = vpow2.f32 %v375_v7  ;;  %869 = vmatpush3.bf16.msra.mxu0 %v957_v22  ;;  %935 = vmatpush3.bf16.msra.mxu1 %v957_v22 }
 0x13f   : > { %974 = vpow2.f32 %v349_v3  ;;  %v377_v15 = vmul.f32 1.442695, %v327_v12  ;;  %v379_v16 = vmul.f32 1.442695, %v328_v52  ;;  %870 = vmatprep.subr.bf16.mxu0 %v958_v23  ;;  %928 = vmatprep.subr.bf16.mxu1 %v958_v23 }
 0x140   : > { %976 = vpow2.f32 %v351_v39  ;;  %v272_v18 = vpop.xlane.xlu1 %271  ;;  %v293_v19 = vpop.xlane.xlu0 %292 }
 0x141   : > { %978 = vpow2.f32 %v377_v15  ;;  %v315_v55 = vsub.f32 %v1149_v42, %v272_v18  ;;  %v316_v54 = vsub.f32 %v1147_v41, %v272_v18  ;;  %v329_v20 = vsub.f32 %v1181_v58, %v293_v19 }
 0x142   : > { %980 = vpow2.f32 %v379_v16  ;;  %v330_v21 = vsub.f32 %v1179_v57, %v293_v19  ;;  %871 = vmatpush3.bf16.msra.mxu0 %v959_v30  ;;  %936 = vmatpush3.bf16.msra.mxu1 %v959_v30 }
 0x143   : > { %v353_v24 = vmul.f32 1.442695, %v315_v55  ;;  %v355_v25 = vmul.f32 1.442695, %v316_v54  ;;  %v381_v26 = vmul.f32 1.442695, %v329_v20  ;;  %872 = vmatprep.subr.bf16.mxu0 %v960_v32  ;;  %929 = vmatprep.subr.bf16.mxu1 %v960_v32 }
 0x144   : > { %v383_v27 = vmul.f32 1.442695, %v330_v21  ;;  %v296_v42 = vpop.xlane.xlu1 %295  ;;  %v275_v28 = vpop.xlane.xlu0 %274 }
 0x145   : > { %982 = vpow2.f32 %v353_v24  ;;  %v331_v41 = vsub.f32 %v1189_v62, %v296_v42  ;;  %v332_v58 = vsub.f32 %v1187_v61, %v296_v42  ;;  %v317_v57 = vsub.f32 %v1153_v44, %v275_v28 }
 0x146   : > { %984 = vpow2.f32 %v355_v25  ;;  %v318_v29 = vsub.f32 %v1151_v43, %v275_v28  ;;  %873 = vmatpush3.bf16.msra.mxu0 %v961_v63  ;;  %937 = vmatpush3.bf16.msra.mxu1 %v961_v63 }
 0x147   : > { %986 = vpow2.f32 %v381_v26  ;;  %v385_v35 = vmul.f32 1.442695, %v331_v41  ;;  %v387_v37 = vmul.f32 1.442695, %v332_v58  ;;  %v357_v40 = vmul.f32 1.442695, %v317_v57 }
 0x148   : > { %988 = vpow2.f32 %v383_v27  ;;  %v359_v62 = vmul.f32 1.442695, %v318_v29  ;;  %v278_v53 = vpop.xlane.xlu1 %277  ;;  %v299_v61 = vpop.xlane.xlu0 %298 }
 0x149   : > { %990 = vpow2.f32 %v385_v35  ;;  %v319_v44 = vsub.f32 %v1157_v46, %v278_v53  ;;  %v320_v43 = vsub.f32 %v1155_v45, %v278_v53  ;;  %v333_v56 = vsub.f32 %v1197_v2, %v299_v61 }
 0x14a   : > { %v1281_v59 = vpop.eup %970  ;;  %992 = vpow2.f32 %v387_v37  ;;  %v334_v60 = vsub.f32 %v1195_v1, %v299_v61 }
 0x14b   : > { %v1285_v0 = vpop.eup %972  ;;  %994 = vpow2.f32 %v357_v40  ;;  %v361_v3 = vmul.f32 1.442695, %v319_v44  ;;  %v363_v4 = vmul.f32 1.442695, %v320_v43  ;;  %v389_v7 = vmul.f32 1.442695, %v333_v56 }
 0x14c   : > { %v1287_v46 = vpop.eup %974  ;;  %996 = vpow2.f32 %v359_v62  ;;  %v391_v45 = vmul.f32 1.442695, %v334_v60  ;;  %v302_v2 = vpop.xlane.xlu1 %301  ;;  %v429_v1 = vadd.f32 %v1285_v0, %v1281_v59 }
 0x14d   : > { %v281_v39 = vpop.xlane.xlu0 %280  ;;  %v1291_v8 = vpop.eup %976  ;;  %998 = vpow2.f32 %v361_v3  ;;  %v335_v38 = vsub.f32 %v1205_v6, %v302_v2  ;;  %v336_v11 = vsub.f32 %v1203_v5, %v302_v2 }
 0x14e   : > { %v321_v12 = vsub.f32 %v1161_v48, %v281_v39  ;;  %v1296_v52 = vpop.eup %978  ;;  %1000 = vpow2.f32 %v363_v4  ;;  %v322_v51 = vsub.f32 %v1159_v47, %v281_v39  ;;  %430 = vadd.xlane.f32.xlu0 %v429_v1  ;;  %v411_v55 = vadd.f32 %v1291_v8, %v1287_v46 }
 0x14f   : > { %v1299_v15 = vpop.eup %980  ;;  %1002 = vpow2.f32 %v389_v7  ;;  %v393_v16 = vmul.f32 1.442695, %v335_v38  ;;  %v395_v17 = vmul.f32 1.442695, %v336_v11 }
 0x150   : > { %v365_v18 = vmul.f32 1.442695, %v321_v12  ;;  %1004 = vpow2.f32 %v391_v45  ;;  %v367_v6 = vmul.f32 1.442695, %v322_v51  ;;  %v284_v19 = vpop.xlane.xlu1 %283  ;;  %v432_v48 = vadd.f32 %v1299_v15, %v1296_v52 }
 0x151   : > { %v305_v5 = vpop.xlane.xlu0 %304  ;;  %1006 = vpow2.f32 %v393_v16  ;;  %v323_v47 = vsub.f32 %v1165_v50, %v284_v19  ;;  %v324_v54 = vsub.f32 %v1163_v49, %v284_v19 }
 0x152   : > { %v337_v20 = vsub.f32 %v1213_v10, %v305_v5  ;;  %v1308_v21 = vpop.eup %982  ;;  %1008 = vpow2.f32 %v395_v17  ;;  %v338_v22 = vsub.f32 %v1211_v9, %v305_v5  ;;  %433 = vadd.xlane.f32.xlu1 %v432_v48  ;;  %412 = vadd.xlane.f32.xlu0 %v411_v55 }
 0x153   : > { %v1311_v23 = vpop.eup %984  ;;  %1010 = vpow2.f32 %v365_v18  ;;  %v369_v24 = vmul.f32 1.442695, %v323_v47  ;;  %v371_v25 = vmul.f32 1.442695, %v324_v54 }
 0x154   : > { %v397_v26 = vmul.f32 1.442695, %v337_v20  ;;  %v1313_v27 = vpop.eup %986  ;;  %1012 = vpow2.f32 %v367_v6  ;;  %v399_v50 = vmul.f32 1.442695, %v338_v22  ;;  %v308_v49 = vpop.xlane.xlu1 %307  ;;  %v414_v10 = vadd.f32 %v1311_v23, %v1308_v21 }
 0x155   : > { %v1317_v42 = vpop.eup %988  ;;  %1014 = vpow2.f32 %v369_v24  ;;  %v339_v9 = vsub.f32 %v1221_v14, %v308_v49  ;;  %v340_v28 = vsub.f32 %v1219_v13, %v308_v49 }
 0x156   : > { %v1321_v41 = vpop.eup %990  ;;  %1016 = vpow2.f32 %v371_v25  ;;  %415 = vadd.xlane.f32.xlu1 %v414_v10  ;;  %v435_v58 = vadd.f32 %v1317_v42, %v1313_v27 }
 0x157   : > { %v1325_v57 = vpop.eup %992  ;;  %1018 = vpow2.f32 %v397_v26  ;;  %v401_v29 = vmul.f32 1.442695, %v339_v9  ;;  %v403_v30 = vmul.f32 1.442695, %v340_v28 }
 0x158   : > { %v1327_v32 = vpop.eup %994  ;;  %1020 = vpow2.f32 %v399_v50  ;;  %436 = vadd.xlane.f32.xlu0 %v435_v58  ;;  %v438_v14 = vadd.f32 %v1325_v57, %v1321_v41 }
 0x159   : > { %v1331_v13 = vpop.eup %996  ;;  %1022 = vpow2.f32 %v401_v29 }
 0x15a   : > { %v1333_v35 = vpop.eup %998  ;;  %1024 = vpow2.f32 %v403_v30  ;;  %439 = vadd.xlane.f32.xlu1 %v438_v14  ;;  %v417_v37 = vadd.f32 %v1331_v13, %v1327_v32 }
 0x15b   : > { %v1337_v40 = vpop.eup %1000 }
 0x15c   : > { %v1339_v62 = vpop.eup %1002  ;;  %418 = vadd.xlane.f32.xlu0 %v417_v37  ;;  %v420_v53 = vadd.f32 %v1337_v40, %v1333_v35 }
 0x15d   : > { %v1343_v61 = vpop.eup %1004 }
 0x15e   : > { %v1345_v44 = vpop.eup %1006  ;;  %421 = vadd.xlane.f32.xlu1 %v420_v53  ;;  %v441_v43 = vadd.f32 %v1343_v61, %v1339_v62 }
 0x15f   : > { %v1349_v56 = vpop.eup %1008 }
 0x160   : > { %v1351_v60 = vpop.eup %1010  ;;  %442 = vadd.xlane.f32.xlu0 %v441_v43  ;;  %v444_v63 = vadd.f32 %v1349_v56, %v1345_v44 }
 0x161   : > { %v1355_v3 = vpop.eup %1012 }
 0x162   : > { %v1357_v4 = vpop.eup %1014  ;;  %445 = vadd.xlane.f32.xlu1 %v444_v63  ;;  %v423_v7 = vadd.f32 %v1355_v3, %v1351_v60 }
 0x163   : > { %v1361_v45 = vpop.eup %1016 }
 0x164   : > { %v1363_v2 = vpop.eup %1018  ;;  %424 = vadd.xlane.f32.xlu0 %v423_v7  ;;  %v426_v39 = vadd.f32 %v1361_v45, %v1357_v4 }
 0x165   : > { %v1367_v1 = vpop.eup %1020 }
 0x166   : > { %v1369_v38 = vpop.eup %1022  ;;  %427 = vadd.xlane.f32.xlu1 %v426_v39  ;;  %v447_v11 = vadd.f32 %v1367_v1, %v1363_v2 }
 0x167   : > { %v1373_v12 = vpop.eup %1024 }
 0x168   : > { %448 = vadd.xlane.f32.xlu0 %v447_v11  ;;  %v450_v51 = vadd.f32 %v1373_v12, %v1369_v38 }
 0x16a   : > { %451 = vadd.xlane.f32.xlu1 %v450_v51 }
 0x1b7   : > { %v407_v16 = vpop.xlane.xlu0 %406 }
 0x1b8   : > { %1026 = vrcp.f32 %v407_v16 }
 0x1bb   : > { %v410_v17 = vpop.xlane.xlu1 %409 }
 0x1bc   : > { %1028 = vrcp.f32 %v410_v17 }
 0x1c5   : > { %v1027_v18 = vpop.eup %1026 }
 0x1c6   : > { %v470_v19 = vmul.f32 %v1027_v18, %v1244_v33  ;;  %v469_v48 = vmul.f32 %v1027_v18, %v1242_v31 }
 0x1c9   : > { %v1029_v6 = vpop.eup %1028 }
 0x1ca   : > { %v472_v5 = vmul.f32 %v1029_v6, %v1250_v36  ;;  %v471_v55 = vmul.f32 %v1029_v6, %v1248_v34 }
 0x1cc   : > { %v502_v47 = vpack.c.bf16 %v472_v5, %v470_v19  ;;  %v501_v54 = vpack.c.bf16 %v471_v55, %v469_v48 }
 0x1ce   : > { %677 = vmatprep.mubr.bf16.mxu0 %v502_v47 }
 0x1cf   : > { %678 = vmatmul.mubr.bf16.vlgmr.msra.gmra.mxu0 %v501_v54 }
 0x1d7   : > { %v431_v20 = vpop.xlane.xlu0 %430 }
 0x1d8   : > { %1030 = vrcp.f32 %v431_v20 }
 0x1db   : > { %v434_v22 = vpop.xlane.xlu1 %433  ;;  %v413_v24 = vpop.xlane.xlu0 %412 }
 0x1dc   : > { %1032 = vrcp.f32 %v434_v22 }
 0x1dd   : > { %1034 = vrcp.f32 %v413_v24 }
 0x1df   : > { %v416_v25 = vpop.xlane.xlu1 %415 }
 0x1e0   : > { %1036 = vrcp.f32 %v416_v25 }
 0x1e1   : > { %v437_v26 = vpop.xlane.xlu0 %436 }
 0x1e2   : > { %1038 = vrcp.f32 %v437_v26 }
 0x1e3   : > { %v440_v33 = vpop.xlane.xlu1 %439 }
 0x1e4   : > { %1040 = vrcp.f32 %v440_v33 }
 0x1e5   : > { %v419_v36 = vpop.xlane.xlu0 %418  ;;  %v1031_v31 = vpop.eup %1030 }
 0x1e6   : > { %1042 = vrcp.f32 %v419_v36  ;;  %v486_v10 = vmul.f32 %v1031_v31, %v1285_v0  ;;  %v485_v58 = vmul.f32 %v1031_v31, %v1281_v59 }
 0x1e7   : > { %v422_v34 = vpop.xlane.xlu1 %421 }
 0x1e8   : > { %1044 = vrcp.f32 %v422_v34 }
 0x1e9   : > { %v1033_v50 = vpop.eup %1032  ;;  %v443_v49 = vpop.xlane.xlu0 %442 }
 0x1ea   : > { %v1035_v9 = vpop.eup %1034  ;;  %1046 = vrcp.f32 %v443_v49  ;;  %v488_v28 = vmul.f32 %v1033_v50, %v1299_v15  ;;  %v487_v29 = vmul.f32 %v1033_v50, %v1296_v52 }
 0x1eb   : > { %v446_v30 = vpop.xlane.xlu1 %445  ;;  %v474_v63 = vmul.f32 %v1035_v9, %v1291_v8  ;;  %v473_v7 = vmul.f32 %v1035_v9, %v1287_v46 }
 0x1ec   : > { %1048 = vrcp.f32 %v446_v30  ;;  %v510_v14 = vpack.c.bf16 %v488_v28, %v486_v10  ;;  %v509_v37 = vpack.c.bf16 %v487_v29, %v485_v58 }
 0x1ed   : > { %v1037_v53 = vpop.eup %1036  ;;  %v425_v43 = vpop.xlane.xlu0 %424 }
 0x1ee   : > { %1050 = vrcp.f32 %v425_v43  ;;  %709 = vmatprep.mubr.bf16.mxu1 %v510_v14  ;;  %v476_v0 = vmul.f32 %v1037_v53, %v1311_v23  ;;  %v475_v15 = vmul.f32 %v1037_v53, %v1308_v21 }
 0x1ef   : > { %v1039_v39 = vpop.eup %1038  ;;  %v428_v59 = vpop.xlane.xlu1 %427  ;;  %710 = vmatmul.mubr.bf16.vlgmr.msra.gmra.mxu1 %v509_v37 }
 0x1f0   : > { %1052 = vrcp.f32 %v428_v59  ;;  %v504_v52 = vpack.c.bf16 %v476_v0, %v474_v63  ;;  %v503_v11 = vpack.c.bf16 %v475_v15, %v473_v7  ;;  %v490_v17 = vmul.f32 %v1039_v39, %v1317_v42 }
 0x1f1   : > { %v1041_v51 = vpop.eup %1040  ;;  %v449_v16 = vpop.xlane.xlu0 %448  ;;  %v489_v23 = vmul.f32 %v1039_v39, %v1313_v27 }
 0x1f2   : > { %1054 = vrcp.f32 %v449_v16  ;;  %685 = vmatprep.mubr.bf16.mxu0 %v504_v52  ;;  %v492_v8 = vmul.f32 %v1041_v51, %v1325_v57  ;;  %v491_v46 = vmul.f32 %v1041_v51, %v1321_v41 }
 0x1f3   : > { %v1043_v18 = vpop.eup %1042  ;;  %v452_v21 = vpop.xlane.xlu1 %451  ;;  %686 = vmatmul.mubr.bf16.gmra.mxu0 %v503_v11 }
 0x1f4   : > { %1056 = vrcp.f32 %v452_v21  ;;  %v512_v6 = vpack.c.bf16 %v492_v8, %v490_v17  ;;  %v511_v19 = vpack.c.bf16 %v491_v46, %v489_v23  ;;  %v478_v48 = vmul.f32 %v1043_v18, %v1331_v13 }
 0x1f5   : > { %v1045_v5 = vpop.eup %1044  ;;  %v477_v55 = vmul.f32 %v1043_v18, %v1327_v32 }
 0x1f6   : > { %717 = vmatprep.mubr.bf16.mxu1 %v512_v6  ;;  %v480_v42 = vmul.f32 %v1045_v5, %v1337_v40  ;;  %v479_v57 = vmul.f32 %v1045_v5, %v1333_v35 }
 0x1f7   : > { %v1047_v47 = vpop.eup %1046  ;;  %718 = vmatmul.mubr.bf16.gmra.mxu1 %v511_v19 }
 0x1f8   : > { %v506_v27 = vpack.c.bf16 %v480_v42, %v478_v48  ;;  %v505_v41 = vpack.c.bf16 %v479_v57, %v477_v55  ;;  %v494_v20 = vmul.f32 %v1047_v47, %v1343_v61  ;;  %v493_v24 = vmul.f32 %v1047_v47, %v1339_v62 }
 0x1f9   : > { %v1049_v54 = vpop.eup %1048 }
 0x1fa   : > { %693 = vmatprep.mubr.bf16.mxu0 %v506_v27  ;;  %v496_v22 = vmul.f32 %v1049_v54, %v1349_v56  ;;  %v495_v13 = vmul.f32 %v1049_v54, %v1345_v44 }
 0x1fb   : > { %v1051_v25 = vpop.eup %1050  ;;  %694 = vmatmul.mubr.bf16.gmra.mxu0 %v505_v41 }
 0x1fc   : > { %v514_v40 = vpack.c.bf16 %v496_v22, %v494_v20  ;;  %v513_v32 = vpack.c.bf16 %v495_v13, %v493_v24  ;;  %v482_v35 = vmul.f32 %v1051_v25, %v1355_v3  ;;  %v481_v36 = vmul.f32 %v1051_v25, %v1351_v60 }
 0x1fd   : > { %v1053_v26 = vpop.eup %1052 }
 0x1fe   : > { %725 = vmatprep.mubr.bf16.mxu1 %v514_v40  ;;  %v484_v33 = vmul.f32 %v1053_v26, %v1361_v45  ;;  %v483_v61 = vmul.f32 %v1053_v26, %v1357_v4 }
 0x1ff   : > { %v1055_v31 = vpop.eup %1054  ;;  %726 = vmatmul.mubr.bf16.gmra.mxu1 %v513_v32 }
 0x200   : > { %v508_v62 = vpack.c.bf16 %v484_v33, %v482_v35  ;;  %v507_v56 = vpack.c.bf16 %v483_v61, %v481_v36  ;;  %v498_v34 = vmul.f32 %v1055_v31, %v1367_v1  ;;  %v497_v49 = vmul.f32 %v1055_v31, %v1363_v2 }
 0x201   : > { %v1057_v44 = vpop.eup %1056 }
 0x202   : > { %701 = vmatprep.mubr.bf16.mxu0 %v508_v62  ;;  %v500_v50 = vmul.f32 %v1057_v44, %v1373_v12  ;;  %v499_v3 = vmul.f32 %v1057_v44, %v1369_v38 }
 0x203   : > { %702 = vmatmul.mubr.bf16.gmra.mxu0 %v507_v56 }
 0x204   : > { %v516_v45 = vpack.c.bf16 %v500_v50, %v498_v34  ;;  %v515_v60 = vpack.c.bf16 %v499_v3, %v497_v49 }
 0x206   : > { %733 = vmatprep.mubr.bf16.mxu1 %v516_v45 }
 0x207   : > { %734 = vmatmul.mubr.bf16.gmra.mxu1 %v515_v60 }
 0x28f   : > { %v874_v4 = vpop.f32.mrf.mxu0 }
 0x291   : > { %v875_v1 = vpop.f32.mrf.mxu0 }
 0x292   : > { %v876_v2 = vadd.f32 %v875_v1, %v874_v4 }
 0x293   : > { %v877_v12 = vpop.f32.mrf.mxu0 }
 0x294   : > { %743 = vst.msk [vmem:[%s1414_s21] sm:$0xff] %vm742_vm0, %v876_v2 }
 0x295   : > { %v878_v38 = vpop.f32.mrf.mxu0 }
 0x296   : > { %v879_v10 = vadd.f32 %v878_v38, %v877_v12 }
 0x298   : > { %744 = vst.msk [vmem:[%s1414_s21 + $0x8] sm:$0xff] %vm742_vm0, %v879_v10 }
 0x2af   : > { %v898_v9 = vpop.f32.mrf.mxu1 }
 0x2b1   : > { %v899_v28 = vpop.f32.mrf.mxu1 }
 0x2b2   : > { %v900_v58 = vadd.f32 %v899_v28, %v898_v9 }
 0x2b3   : > { %v880_v29 = vpop.f32.mrf.mxu0  ;;  %v901_v30 = vpop.f32.mrf.mxu1 }
 0x2b4   : > { %751 = vst.msk [vmem:[%s1414_s21 + $0x40] sm:$0xff] %vm742_vm0, %v900_v58 }
 0x2b5   : > { %v881_v14 = vpop.f32.mrf.mxu0  ;;  %v902_v37 = vpop.f32.mrf.mxu1 }
 0x2b6   : > { %v882_v53 = vadd.f32 %v881_v14, %v880_v29  ;;  %v903_v43 = vadd.f32 %v902_v37, %v901_v30 }
 0x2b7   : > { %v883_v63 = vpop.f32.mrf.mxu0  ;;  %v904_v0 = vpop.f32.mrf.mxu1 }
 0x2b8   : > { %745 = vst.msk [vmem:[%s1414_s21 + $0x10] sm:$0xff] %vm742_vm0, %v882_v53  ;;  %752 = vst.msk [vmem:[%s1414_s21 + $0x48] sm:$0xff] %vm742_vm0, %v903_v43 }
 0x2b9   : > { %v884_v7 = vpop.f32.mrf.mxu0  ;;  %v905_v15 = vpop.f32.mrf.mxu1 }
 0x2ba   : > { %v885_v39 = vadd.f32 %v884_v7, %v883_v63  ;;  %v906_v59 = vadd.f32 %v905_v15, %v904_v0 }
 0x2bb   : > { %v886_v52 = vpop.f32.mrf.mxu0  ;;  %v907_v11 = vpop.f32.mrf.mxu1 }
 0x2bc   : > { %746 = vst.msk [vmem:[%s1414_s21 + $0x18] sm:$0xff] %vm742_vm0, %v885_v39  ;;  %753 = vst.msk [vmem:[%s1414_s21 + $0x50] sm:$0xff] %vm742_vm0, %v906_v59 }
 0x2bd   : > { %v887_v51 = vpop.f32.mrf.mxu0  ;;  %v908_v16 = vpop.f32.mrf.mxu1 }
 0x2be   : > { %v888_v17 = vadd.f32 %v887_v51, %v886_v52  ;;  %v909_v8 = vadd.f32 %v908_v16, %v907_v11 }
 0x2bf   : > { %v889_v23 = vpop.f32.mrf.mxu0  ;;  %v910_v46 = vpop.f32.mrf.mxu1 }
 0x2c0   : > { %747 = vst.msk [vmem:[%s1414_s21 + $0x20] sm:$0xff] %vm742_vm0, %v888_v17  ;;  %754 = vst.msk [vmem:[%s1414_s21 + $0x58] sm:$0xff] %vm742_vm0, %v909_v8 }
 0x2c1   : > { %v890_v18 = vpop.f32.mrf.mxu0  ;;  %v911_v21 = vpop.f32.mrf.mxu1 }
 0x2c2   : > { %v891_v6 = vadd.f32 %v890_v18, %v889_v23  ;;  %v912_v19 = vadd.f32 %v911_v21, %v910_v46 }
 0x2c3   : > { %v892_v5 = vpop.f32.mrf.mxu0  ;;  %v913_v48 = vpop.f32.mrf.mxu1 }
 0x2c4   : > { %748 = vst.msk [vmem:[%s1414_s21 + $0x28] sm:$0xff] %vm742_vm0, %v891_v6  ;;  %755 = vst.msk [vmem:[%s1414_s21 + $0x60] sm:$0xff] %vm742_vm0, %v912_v19 }
 0x2c5   : > { %v893_v42 = vpop.f32.mrf.mxu0  ;;  %v914_v55 = vpop.f32.mrf.mxu1 }
 0x2c6   : > { %v894_v57 = vadd.f32 %v893_v42, %v892_v5  ;;  %v915_v47 = vadd.f32 %v914_v55, %v913_v48 }
 0x2c7   : > { %v895_v27 = vpop.f32.mrf.mxu0  ;;  %v916_v41 = vpop.f32.mrf.mxu1 }
 0x2c8   : > { %749 = vst.msk [vmem:[%s1414_s21 + $0x30] sm:$0xff] %vm742_vm0, %v894_v57  ;;  %756 = vst.msk [vmem:[%s1414_s21 + $0x68] sm:$0xff] %vm742_vm0, %v915_v47 }
 0x2c9   : > { %v896_v54 = vpop.f32.mrf.mxu0  ;;  %v917_v20 = vpop.f32.mrf.mxu1 }
 0x2ca   : > { %v897_v22 = vadd.f32 %v896_v54, %v895_v27  ;;  %v918_v24 = vadd.f32 %v917_v20, %v916_v41 }
 0x2cb   : > { %v919_v13 = vpop.f32.mrf.mxu1 }
 0x2cc   : > { %750 = vst.msk [vmem:[%s1414_s21 + $0x38] sm:$0xff] %vm742_vm0, %v897_v22  ;;  %757 = vst.msk [vmem:[%s1414_s21 + $0x70] sm:$0xff] %vm742_vm0, %v918_v24 }
 0x2cd   : > { %v920_v25 = vpop.f32.mrf.mxu1 }
 0x2ce   : > { %v921_v40 = vadd.f32 %v920_v25, %v919_v13 }
 0x2d0   : > { %758 = vst.msk [vmem:[%s1414_s21 + $0x78] sm:$0xff] %vm742_vm0, %v921_v40 }
 0x2d1 PF: > { %s12_s9 = sadd.s32 1, %s1064_s9  }
 0x2d2   : > { %p9_p4 = scmp.ge.s32.totalorder %s12_s9, 4  }
 0x2d4   :  { %11 = sbr.rel (!%p9_p4) target bundleno = 1 (0x1), region = 61 }

// kernel: mul.24
= control target key start
LH: loop header
LB: loop body
LE: loop exit
PB: predicated region body
PF: predicated region fallthrough
CT: control target
= control target key end

     0   :  { %s34_s0 = inlined_call_operand.vmem [shape: f32[2,72], index: 0, kind: input, shape index: {}]   ;;  %s35_s1 = inlined_call_operand.vmem [shape: f32[2,72], index: 1, kind: input, shape index: {}]   ;;  %s36_s2 = inlined_call_operand.vmem [shape: f32[2,72], index: 2, kind: output, shape index: {}]  }
   0x1   :  { %v3_v0 = vld [vmem:[%s34_s0] sm:$0x3] }
   0x2   :  { %v4_v1 = vld [vmem:[%s35_s1] sm:$0x3] }
   0x3   :  { %v7_v2 = vmul.f32 %v4_v1, %v3_v0 }
   0x5   :  { %9 = vst [vmem:[%s36_s2] sm:$0x3] %v7_v2 }

</bundles_post_ra>
